<compile_context>
chip_gen: v6e
topology: v6e:2x2x1
jax: 0.10.0
libtpu: 0.0.40
codegen_flags: <defaults>
</compile_context>

<pallas_src>
import jax
import jax.numpy as jnp
from jax.experimental import pallas as pl
from jax.experimental.pallas import tpu as pltpu

LANE = 128  # lane-dense padded width for hidden (H) and class (C) dims


# ----------------------------- Pallas kernels ------------------------------ #
def gcn_fused_kernel(a_ref, xw_ref, b1_ref, w2_ref, b2_ref, wo_ref, bo_ref, out_ref):
    """Whole 3-layer GCN on a VMEM-resident graph (small-graph fast path).

    a_ref:  (N, N)    bf16 normalized adjacency
    xw_ref: (N, 128)  bf16 staged X @ W1 (lane-padded)
    b*_ref: (1, 128)  f32 biases (bo has -1e30 baked into padded class lanes)
    w*_ref: (128,128) bf16 weights (zero padded)
    out_ref:(N, 128)  f32 softmax probabilities (padded lanes ~ 0)
    """
    a = a_ref[...]
    h1 = jnp.maximum(
        jnp.dot(a, xw_ref[...], preferred_element_type=jnp.float32) + b1_ref[...], 0.0)
    # Dropout(p=0.5) -> eval-mode identity.
    h1w2 = jnp.dot(h1.astype(a.dtype), w2_ref[...], preferred_element_type=jnp.float32)
    h2 = jnp.maximum(
        jnp.dot(a, h1w2.astype(a.dtype), preferred_element_type=jnp.float32)
        + b2_ref[...], 0.0)
    logits = jnp.dot(h2.astype(a.dtype), wo_ref[...],
                     preferred_element_type=jnp.float32) + bo_ref[...]
    m = jnp.max(logits, axis=1, keepdims=True)
    e = jnp.exp(logits - m)
    out_ref[...] = e * pl.reciprocal(jnp.sum(e, axis=1, keepdims=True), approx=True)


def gcn_prop_kernel(a_ref, xw_ref, b_ref, wn_ref, out_ref, acc_ref):
    """out = relu(A_rowtile @ XW + b) @ W_next with K-tiled A (f32 accumulator).

    Grid is (row_tiles, k_tiles) with k last / "arbitrary".
    """
    k = pl.program_id(1)

    @pl.when(k == 0)
    def _():
        acc_ref[...] = jnp.zeros_like(acc_ref)

    acc_ref[...] += jnp.dot(a_ref[...], xw_ref[...], preferred_element_type=jnp.float32)

    @pl.when(k == pl.num_programs(1) - 1)
    def _():
        h = jnp.maximum(acc_ref[...] + b_ref[...], 0.0)  # ReLU; dropout -> identity
        out_ref[...] = jnp.dot(h.astype(wn_ref.dtype), wn_ref[...],
                               preferred_element_type=jnp.float32).astype(out_ref.dtype)


def gcn_head_kernel(a_ref, hw_ref, b_ref, wo_ref, bo_ref, out_ref, acc_ref):
    """out = softmax(relu(A_rowtile @ HW + b) @ Wo + bo); class mask baked into bo."""
    k = pl.program_id(1)

    @pl.when(k == 0)
    def _():
        acc_ref[...] = jnp.zeros_like(acc_ref)

    acc_ref[...] += jnp.dot(a_ref[...], hw_ref[...], preferred_element_type=jnp.float32)

    @pl.when(k == pl.num_programs(1) - 1)
    def _():
        h = jnp.maximum(acc_ref[...] + b_ref[...], 0.0)  # ReLU; dropout -> identity
        logits = jnp.dot(h.astype(wo_ref.dtype), wo_ref[...],
                         preferred_element_type=jnp.float32) + bo_ref[...]
        m = jnp.max(logits, axis=1, keepdims=True)
        e = jnp.exp(logits - m)
        out_ref[...] = e * pl.reciprocal(jnp.sum(e, axis=1, keepdims=True), approx=True)


# ------------------------------ JAX wrapper -------------------------------- #
def _tpu_defaults():
    """(row_tile, vmem_limit_bytes) tuned per TPU generation."""
    kind = ""
    try:
        kind = jax.devices()[0].device_kind.lower()
    except Exception:
        pass
    vmem_cap = 128 * 1024 * 1024
    try:
        vmem_cap = int(pltpu.get_tpu_info().vmem_capacity_bytes)
    except Exception:
        pass
    # ~25% headroom, capped at 96 MiB (v5e/v6e: 128 MiB physical, v7x: 64 MiB).
    vmem_limit = min(vmem_cap * 3 // 4, 96 * 1024 * 1024)
    # v6e/v7x MXU is 256 rows tall -> prefer 256-row slabs; v5e (4x128^2) stays at 128.
    tile_m = 256 if ("v6" in kind or "v7" in kind) else 128
    return tile_m, vmem_limit


def _pad2(x, rows, cols, fill=0.0):
    out = jnp.full((rows, cols), fill, x.dtype)
    return out.at[: x.shape[0], : x.shape[1]].set(x)


def gcn_forward(a_norm, x, w1, b1, w2, b2, wo, bo, *, tile_m=None, force_tiled=False):
    """GCN forward: softmax( relu(A @ relu(A @ X@W1 + b1) @ W2 + b2) @ Wo + bo ).

    a_norm: (N, N) normalized adjacency -- pass it pre-cast to bf16 to avoid a per-call
    O(N^2) cast.  x: (N, F_in) f32.  Biases shaped (1, dim).  Returns (N, C) f32.
    """
    N, F_in = x.shape
    C = wo.shape[1]

    auto_tm, vmem_limit = _tpu_defaults()
    tm = auto_tm if tile_m is None else max(128, (int(tile_m) // 128) * 128)

    a_bf = a_norm if a_norm.dtype == jnp.bfloat16 else a_norm.astype(jnp.bfloat16)

    # Lane-dense padded parameters (bf16 MXU operands, f32 biases).
    w1_p = _pad2(w1.astype(jnp.bfloat16), F_in, LANE)
    w2_p = _pad2(w2.astype(jnp.bfloat16), LANE, LANE)
    wo_p = _pad2(wo.astype(jnp.bfloat16), LANE, LANE)
    b1_p = _pad2(b1.astype(jnp.float32), 1, LANE)
    b2_p = _pad2(b2.astype(jnp.float32), 1, LANE)
    # Padded-class mask baked into the bias (finite -1e30, not -inf).
    bo_p = _pad2(bo.astype(jnp.float32), 1, LANE, fill=-1e30)

    # Skinny feature transform X @ W1 (F_in-wide contraction): plain XLA, computed once.
    xw1 = jnp.dot(x.astype(jnp.bfloat16), w1_p,
                  preferred_element_type=jnp.float32).astype(jnp.bfloat16)  # (N, LANE)

    # ---- Small-graph fast path: one pallas_call, everything VMEM-resident ---------- #
    fused_bytes = 2 * N * N + 12 * N * LANE * 4   # bf16 A + f32 intermediates/output
    if (not force_tiled and N % 8 == 0
            and fused_bytes <= min(vmem_limit, 24 * 1024 * 1024)):
        out_padded = pl.pallas_call(
            gcn_fused_kernel,
            out_shape=jax.ShapeDtypeStruct((N, LANE), jnp.float32),
            grid=(1,),
            in_specs=[
                pl.BlockSpec((N, N), lambda i: (0, 0)),        # A_hat (resident)
                pl.BlockSpec((N, LANE), lambda i: (0, 0)),     # X @ W1
                pl.BlockSpec((1, LANE), lambda i: (0, 0)),     # b1
                pl.BlockSpec((LANE, LANE), lambda i: (0, 0)),  # W2
                pl.BlockSpec((1, LANE), lambda i: (0, 0)),     # b2
                pl.BlockSpec((LANE, LANE), lambda i: (0, 0)),  # Wo
                pl.BlockSpec((1, LANE), lambda i: (0, 0)),     # bo (mask baked in)
            ],
            out_specs=pl.BlockSpec((N, LANE), lambda i: (0, 0)),
            compiler_params=pltpu.CompilerParams(vmem_limit_bytes=vmem_limit),
        )(a_bf, xw1, b1_p, w2_p, b2_p, wo_p, bo_p)
        return out_padded[:, :C]

    # ---- Large-graph tiled path: (rows, k) grid over A, f32 accumulator scratch ---- #
    n_pad = pl.cdiv(N, tm) * tm
    if n_pad // tm < 2 and n_pad > 128:
        tm = 128                       # keep >=2 row tiles for the v7x megacore axis
        n_pad = pl.cdiv(N, tm) * tm
    tk = tm                            # K tile; tm | n_pad so the K grid is exact

    if n_pad != N:
        a_p = jnp.zeros((n_pad, n_pad), a_bf.dtype).at[:N, :N].set(a_bf)
        xw1_p = jnp.zeros((n_pad, LANE), xw1.dtype).at[:N].set(xw1)
    else:
        a_p, xw1_p = a_bf, xw1

    grid = (n_pad // tm, n_pad // tk)
    cp_tiled = pltpu.CompilerParams(
        dimension_semantics=("parallel", "arbitrary"),
        vmem_limit_bytes=vmem_limit,
    )
    in_specs_common = [
        pl.BlockSpec((tm, tk), lambda i, k: (i, k)),       # A_hat tile
        pl.BlockSpec((tk, LANE), lambda i, k: (k, 0)),     # staged activation tile
        pl.BlockSpec((1, LANE), lambda i, k: (0, 0)),      # bias
        pl.BlockSpec((LANE, LANE), lambda i, k: (0, 0)),   # next-layer weight
    ]
    out_spec = pl.BlockSpec((tm, LANE), lambda i, k: (i, 0))

    # pass A: H1W2 = relu(A @ XW1 + b1) @ W2   (lane-dense bf16 staging to HBM)
    h1w2 = pl.pallas_call(
        gcn_prop_kernel,
        out_shape=jax.ShapeDtypeStruct((n_pad, LANE), jnp.bfloat16),
        grid=grid,
        in_specs=in_specs_common,
        out_specs=out_spec,
        scratch_shapes=[pltpu.VMEM((tm, LANE), jnp.float32)],
        compiler_params=cp_tiled,
    )(a_p, xw1_p, b1_p, w2_p)

    # pass B: P = softmax(relu(A @ H1W2 + b2) @ Wo + bo)
    out_padded = pl.pallas_call(
        gcn_head_kernel,
        out_shape=jax.ShapeDtypeStruct((n_pad, LANE), jnp.float32),
        grid=grid,
        in_specs=in_specs_common + [pl.BlockSpec((1, LANE), lambda i, k: (0, 0))],
        out_specs=out_spec,
        scratch_shapes=[pltpu.VMEM((tm, LANE), jnp.float32)],
        compiler_params=cp_tiled,
    )(a_p, h1w2, b2_p, wo_p, bo_p)

    return out_padded[:N, :C]


# --------------------------- Glue: graph prep ------------------------------ #
def normalized_adjacency(edge_index, num_nodes):
    """Dense D^-1/2 (A + I) D^-1/2 matching PyG GCNConv default normalization."""
    src, dst = edge_index
    a = jnp.zeros((num_nodes, num_nodes), jnp.float32)
    a = a.at[dst, src].set(1.0)                      # message src -> dst
    a = a + jnp.eye(num_nodes, dtype=jnp.float32)    # add self loops
    deg = jnp.sum(a, axis=1)
    dinv = jnp.where(deg > 0, 1.0 / jnp.sqrt(deg), 0.0)
    return a * dinv[:, None] * dinv[None, :]


# ------------------------------- Main -------------------------------------- #
if __name__ == "__main__":
    key = jax.random.PRNGKey(0)

    # N nodes, F_in node features, hidden H, 5 classes.
    N, F_in, H, C = 256, 8, 32, 5

    k_x, k_w1, k_w2, k_wo = jax.random.split(key, 4)

    # Deterministic synthetic node features.
    x = jax.random.normal(k_x, (N, F_in), jnp.float32)

    # Deterministic synthetic edge list: ring graph + long chords (both directions).
    ring_src = jnp.arange(N)
    ring_dst = (jnp.arange(N) + 1) % N
    chord_src = jnp.arange(0, N, 16)
    chord_dst = (chord_src + N // 2) % N
    src = jnp.concatenate([ring_src, ring_dst, chord_src, chord_dst])
    dst = jnp.concatenate([ring_dst, ring_src, chord_dst, chord_src])
    edge_index = jnp.stack([src, dst], axis=0)       # (2, E), like PyG edge_index

    # Cast A_hat to bf16 ONCE (kept bf16 across forward calls).
    a_norm = normalized_adjacency(edge_index, N)
    a_bf = a_norm.astype(jnp.bfloat16)

    # Deterministic parameter init (Glorot-style weights, zero biases).
    def glorot(k, shape):
        fan_in, fan_out = shape
        s = jnp.sqrt(6.0 / (fan_in + fan_out))
        return jax.random.uniform(k, shape, jnp.float32, -s, s)

    w1 = glorot(k_w1, (F_in, H))
    b1 = jnp.zeros((1, H), jnp.float32)
    w2 = glorot(k_w2, (H, H))
    b2 = jnp.zeros((1, H), jnp.float32)
    wo = glorot(k_wo, (H, C))
    bo = jnp.zeros((1, C), jnp.float32)

    # Fast (single fused call) path and large-graph tiled path (exercise both).
    out = gcn_forward(a_bf, x, w1, b1, w2, b2, wo, bo)
    out_tiled = gcn_forward(a_bf, x, w1, b1, w2, b2, wo, bo, force_tiled=True)
    out, out_tiled = jax.block_until_ready((out, out_tiled))

    # Reference 1: plain JAX mirroring the kernel's bf16-operand / f32-accum math.
    x_bf = x.astype(jnp.bfloat16)
    w1_bf, w2_bf, wo_bf = (w.astype(jnp.bfloat16) for w in (w1, w2, wo))
    xw1_r = jnp.dot(x_bf, w1_bf, preferred_element_type=jnp.float32).astype(jnp.bfloat16)
    h1_r = jnp.maximum(jnp.dot(a_bf, xw1_r, preferred_element_type=jnp.float32) + b1, 0.0)
    h1w2_r = jnp.dot(h1_r.astype(jnp.bfloat16), w2_bf,
                     preferred_element_type=jnp.float32).astype(jnp.bfloat16)
    h2_r = jnp.maximum(jnp.dot(a_bf, h1w2_r, preferred_element_type=jnp.float32) + b2, 0.0)
    logits_r = jnp.dot(h2_r.astype(jnp.bfloat16), wo_bf,
                       preferred_element_type=jnp.float32) + bo
    ref_bf16 = jax.nn.softmax(logits_r, axis=1)

    # Reference 2: full f32 math (loose semantic sanity check).
    h = jnp.maximum(a_norm @ (x @ w1) + b1, 0.0)
    h = jnp.maximum(a_norm @ (h @ w2) + b2, 0.0)
    ref_f32 = jax.nn.softmax(h @ wo + bo, axis=1)

    assert out.shape == (N, C) and out_tiled.shape == (N, C)
    assert jnp.allclose(out, ref_bf16, atol=3e-3), "fused path mismatch vs. bf16 ref"
    assert jnp.allclose(out_tiled, ref_bf16, atol=3e-3), "tiled path mismatch vs. bf16 ref"
    assert jnp.allclose(out, out_tiled, atol=3e-3), "fused vs. tiled mismatch"
    assert jnp.allclose(out, ref_f32, atol=5e-2), "mismatch vs. f32 reference"
    assert jnp.allclose(jnp.sum(out, axis=1), 1.0, atol=5e-3)
    assert jnp.allclose(jnp.sum(out_tiled, axis=1), 1.0, atol=5e-3)

    print("KERNEL_OK")
</pallas_src>

<mosaic_0001>
module attributes {stable_mosaic.version = 11 : i64} {
  func.func @gcn_fused_kernel(%arg0: i32, %arg1: memref<256x256xbf16, #tpu.memory_space<vmem>>, %arg2: memref<256x128xbf16, #tpu.memory_space<vmem>>, %arg3: memref<1x128xf32, #tpu.memory_space<vmem>>, %arg4: memref<128x128xbf16, #tpu.memory_space<vmem>>, %arg5: memref<1x128xf32, #tpu.memory_space<vmem>>, %arg6: memref<128x128xbf16, #tpu.memory_space<vmem>>, %arg7: memref<1x128xf32, #tpu.memory_space<vmem>>, %arg8: memref<256x128xf32, #tpu.memory_space<vmem>>) attributes {dimension_semantics = [#tpu.dimension_semantics<arbitrary>], iteration_bounds = array<i64: 1>, scalar_prefetch = 0 : i64, scratch_operands = 0 : i64, tpu.core_type = #tpu.core_type<tc>, window_params = [{pipeline_mode = #tpu.pipeline_mode<synchronous>, transform_indices = @transform_0, window_bounds = array<i64: 256, 256>}, {pipeline_mode = #tpu.pipeline_mode<synchronous>, transform_indices = @transform_1, window_bounds = array<i64: 256, 128>}, {pipeline_mode = #tpu.pipeline_mode<synchronous>, transform_indices = @transform_2, window_bounds = array<i64: 1, 128>}, {pipeline_mode = #tpu.pipeline_mode<synchronous>, transform_indices = @transform_3, window_bounds = array<i64: 128, 128>}, {pipeline_mode = #tpu.pipeline_mode<synchronous>, transform_indices = @transform_4, window_bounds = array<i64: 1, 128>}, {pipeline_mode = #tpu.pipeline_mode<synchronous>, transform_indices = @transform_5, window_bounds = array<i64: 128, 128>}, {pipeline_mode = #tpu.pipeline_mode<synchronous>, transform_indices = @transform_6, window_bounds = array<i64: 1, 128>}, {pipeline_mode = #tpu.pipeline_mode<synchronous>, transform_indices = @transform_7, window_bounds = array<i64: 256, 128>}]} {
    %c0 = arith.constant 0 : index
    %c0_0 = arith.constant 0 : index
    %0 = vector.load %arg1[%c0, %c0_0] : memref<256x256xbf16, #tpu.memory_space<vmem>>, vector<256x256xbf16>
    %c0_1 = arith.constant 0 : index
    %c0_2 = arith.constant 0 : index
    %1 = vector.load %arg2[%c0_1, %c0_2] : memref<256x128xbf16, #tpu.memory_space<vmem>>, vector<256x128xbf16>
    %cst = arith.constant dense<0.000000e+00> : vector<256x128xf32>
    %2 = tpu.matmul %0, %1, %cst {dimension_numbers = #tpu.dot_dimension_numbers<[1], [0], [0], [1], [0, 0, 1, 1], [], []>} : vector<256x256xbf16>, vector<256x128xbf16>, vector<256x128xf32> -> vector<256x128xf32>
    %c0_3 = arith.constant 0 : index
    %c0_4 = arith.constant 0 : index
    %3 = vector.load %arg3[%c0_3, %c0_4] : memref<1x128xf32, #tpu.memory_space<vmem>>, vector<1x128xf32>
    %4 = vector.broadcast %3 : vector<1x128xf32> to vector<256x128xf32>
    %5 = arith.addf %2, %4 : vector<256x128xf32>
    %cst_5 = arith.constant 0.000000e+00 : f32
    %6 = vector.broadcast %cst_5 : f32 to vector<256x128xf32>
    %7 = arith.maximumf %5, %6 : vector<256x128xf32>
    %8 = arith.truncf %7 : vector<256x128xf32> to vector<256x128xbf16>
    %c0_6 = arith.constant 0 : index
    %c0_7 = arith.constant 0 : index
    %9 = vector.load %arg4[%c0_6, %c0_7] : memref<128x128xbf16, #tpu.memory_space<vmem>>, vector<128x128xbf16>
    %cst_8 = arith.constant dense<0.000000e+00> : vector<256x128xf32>
    %10 = tpu.matmul %8, %9, %cst_8 {dimension_numbers = #tpu.dot_dimension_numbers<[1], [0], [0], [1], [0, 0, 1, 1], [], []>} : vector<256x128xbf16>, vector<128x128xbf16>, vector<256x128xf32> -> vector<256x128xf32>
    %11 = arith.truncf %10 : vector<256x128xf32> to vector<256x128xbf16>
    %cst_9 = arith.constant dense<0.000000e+00> : vector<256x128xf32>
    %12 = tpu.matmul %0, %11, %cst_9 {dimension_numbers = #tpu.dot_dimension_numbers<[1], [0], [0], [1], [0, 0, 1, 1], [], []>} : vector<256x256xbf16>, vector<256x128xbf16>, vector<256x128xf32> -> vector<256x128xf32>
    %c0_10 = arith.constant 0 : index
    %c0_11 = arith.constant 0 : index
    %13 = vector.load %arg5[%c0_10, %c0_11] : memref<1x128xf32, #tpu.memory_space<vmem>>, vector<1x128xf32>
    %14 = vector.broadcast %13 : vector<1x128xf32> to vector<256x128xf32>
    %15 = arith.addf %12, %14 : vector<256x128xf32>
    %cst_12 = arith.constant 0.000000e+00 : f32
    %16 = vector.broadcast %cst_12 : f32 to vector<256x128xf32>
    %17 = arith.maximumf %15, %16 : vector<256x128xf32>
    %18 = arith.truncf %17 : vector<256x128xf32> to vector<256x128xbf16>
    %c0_13 = arith.constant 0 : index
    %c0_14 = arith.constant 0 : index
    %19 = vector.load %arg6[%c0_13, %c0_14] : memref<128x128xbf16, #tpu.memory_space<vmem>>, vector<128x128xbf16>
    %cst_15 = arith.constant dense<0.000000e+00> : vector<256x128xf32>
    %20 = tpu.matmul %18, %19, %cst_15 {dimension_numbers = #tpu.dot_dimension_numbers<[1], [0], [0], [1], [0, 0, 1, 1], [], []>} : vector<256x128xbf16>, vector<128x128xbf16>, vector<256x128xf32> -> vector<256x128xf32>
    %c0_16 = arith.constant 0 : index
    %c0_17 = arith.constant 0 : index
    %21 = vector.load %arg7[%c0_16, %c0_17] : memref<1x128xf32, #tpu.memory_space<vmem>>, vector<1x128xf32>
    %22 = vector.broadcast %21 : vector<1x128xf32> to vector<256x128xf32>
    %23 = arith.addf %20, %22 : vector<256x128xf32>
    %cst_18 = arith.constant dense<0xFF800000> : vector<256xf32>
    %24 = vector.multi_reduction <maximumf>, %23, %cst_18 [1] : vector<256x128xf32> to vector<256xf32>
    %25 = vector.shape_cast %24 : vector<256xf32> to vector<256x1xf32>
    %26 = vector.broadcast %25 : vector<256x1xf32> to vector<256x128xf32>
    %27 = arith.subf %23, %26 : vector<256x128xf32>
    %28 = math.exp %27 : vector<256x128xf32>
    %cst_19 = arith.constant dense<0.000000e+00> : vector<256xf32>
    %29 = vector.multi_reduction <add>, %28, %cst_19 [1] : vector<256x128xf32> to vector<256xf32>
    %30 = vector.shape_cast %29 : vector<256xf32> to vector<256x1xf32>
    %31 = tpu.reciprocal %30 {approx = true} : vector<256x1xf32> -> vector<256x1xf32>
    %32 = vector.broadcast %31 : vector<256x1xf32> to vector<256x128xf32>
    %33 = arith.mulf %28, %32 : vector<256x128xf32>
    %c0_20 = arith.constant 0 : index
    %c0_21 = arith.constant 0 : index
    %34 = vector.load %arg8[%c0_20, %c0_21] : memref<256x128xf32, #tpu.memory_space<vmem>>, vector<256x128xf32>
    tpu.vector_store %arg8[%c0_20, %c0_21], %33 {strides = array<i32>} : memref<256x128xf32, #tpu.memory_space<vmem>>, vector<256x128xf32>,
    return
  }
  func.func @transform_0(%arg0: i32) -> (i32, i32) {
    %c0_i32 = arith.constant 0 : i32
    %c0_i32_0 = arith.constant 0 : i32
    %c0_i32_1 = arith.constant 0 : i32
    return %c0_i32, %c0_i32_0 : i32, i32
  }
  func.func @transform_1(%arg0: i32) -> (i32, i32) {
    %c0_i32 = arith.constant 0 : i32
    %c0_i32_0 = arith.constant 0 : i32
    %c0_i32_1 = arith.constant 0 : i32
    return %c0_i32, %c0_i32_0 : i32, i32
  }
  func.func @transform_2(%arg0: i32) -> (i32, i32) {
    %c0_i32 = arith.constant 0 : i32
    %c0_i32_0 = arith.constant 0 : i32
    %c0_i32_1 = arith.constant 0 : i32
    return %c0_i32, %c0_i32_0 : i32, i32
  }
  func.func @transform_3(%arg0: i32) -> (i32, i32) {
    %c0_i32 = arith.constant 0 : i32
    %c0_i32_0 = arith.constant 0 : i32
    %c0_i32_1 = arith.constant 0 : i32
    return %c0_i32, %c0_i32_0 : i32, i32
  }
  func.func @transform_4(%arg0: i32) -> (i32, i32) {
    %c0_i32 = arith.constant 0 : i32
    %c0_i32_0 = arith.constant 0 : i32
    %c0_i32_1 = arith.constant 0 : i32
    return %c0_i32, %c0_i32_0 : i32, i32
  }
  func.func @transform_5(%arg0: i32) -> (i32, i32) {
    %c0_i32 = arith.constant 0 : i32
    %c0_i32_0 = arith.constant 0 : i32
    %c0_i32_1 = arith.constant 0 : i32
    return %c0_i32, %c0_i32_0 : i32, i32
  }
  func.func @transform_6(%arg0: i32) -> (i32, i32) {
    %c0_i32 = arith.constant 0 : i32
    %c0_i32_0 = arith.constant 0 : i32
    %c0_i32_1 = arith.constant 0 : i32
    return %c0_i32, %c0_i32_0 : i32, i32
  }
  func.func @transform_7(%arg0: i32) -> (i32, i32) {
    %c0_i32 = arith.constant 0 : i32
    %c0_i32_0 = arith.constant 0 : i32
    %c0_i32_1 = arith.constant 0 : i32
    return %c0_i32, %c0_i32_0 : i32, i32
  }
}

</mosaic_0001>

<bundles_post_ra>
// kernel: tpu_custom_call.1
= control target key start
LH: loop header
LB: loop body
LE: loop exit
PB: predicated region body
PF: predicated region fallthrough
CT: control target
= control target key end

     0   :  { %12 = vsyncpa [#allocation3], 0  ;;  %s2993_s0 = inlined_call_operand.hbm [shape: bf16[256,256], index: 0, kind: input, shape index: {}]   ;;  %s2994_s1 = inlined_call_operand.hbm [shape: bf16[256,128], index: 1, kind: input, shape index: {}]   ;;  %s2995_s2 = inlined_call_operand.vmem [shape: f32[1,128], index: 2, kind: input, shape index: {}]   ;;  %s2996_s3 = inlined_call_operand.hbm [shape: bf16[128,128], index: 3, kind: input, shape index: {}]   ;;  %s2997_s4 = inlined_call_operand.vmem [shape: f32[1,128], index: 4, kind: input, shape index: {}]   ;;  %s2998_s5 = inlined_call_operand.hbm [shape: bf16[128,128], index: 5, kind: input, shape index: {}]   ;;  %s2999_s6 = inlined_call_operand.vmem [shape: f32[1,128], index: 6, kind: input, shape index: {}]   ;;  %s3000_s7 = inlined_call_operand.hbm [shape: f32[256,128], index: 7, kind: output, shape index: {}]  }
   0x1   :  { %13 = vsyncpa [#allocation6], 0 }
   0x2   :  { %14 = vsyncpa [#allocation9], 0 }
   0x3   :  { %15 = vsyncpa [#allocation4], 0  ;;  %s2407_s24 = smov [#allocation5]  }
   0x4   :  { %s33_s25 = sshll.u32 %s2407_s24, 4  ;;  %s34_s25 = int_to_ptr.vmem [resolvable:$true] %s33_s25 }
   0x5   :  { %s2307_s26 = scalar_lea.vmem %s34_s25, 2048  ;;  %p2312_p1 = scmp.lt.s32.totalorder %s34_s25, %s34_s25 }
   0x6   :  { %p2308_p0 = scmp.ne.s32.totalorder %s34_s25, %s2307_s26  ;;  %p2313_p2 = scmp.lt.s32.totalorder %s2307_s26, %s2307_s26 }
   0x8   :  { %p2314_p3 = por %p2313_p2, %p2312_p1 }
   0xa   :  { %p2315_p4 = pnand %p2314_p3, %p2308_p0 }
   0xc   :  { %2318 = shalt.err (!%p2315_p4)
}
   0xd   :  { %s2408_s27 = smov 64   ;;  %s2409_s28 = smov 4  }
   0xe   :  { %39 = dma.hbm_to_vmem [thread:$0]  %s2994_s1, 2048, %s34_s25, [#allocation6], %s2408_s27, %s2408_s27, %s2409_s28  }
   0xf   :  { %s2410_s8 = smov [#allocation2]  }
  0x10   :  { %s21_s9 = sshll.u32 %s2410_s8, 4  ;;  %s22_s9 = int_to_ptr.vmem [resolvable:$true] %s21_s9 }
  0x11   :  { %s2327_s10 = scalar_lea.vmem %s22_s9, 4096  ;;  %p2332_p6 = scmp.lt.s32.totalorder %s22_s9, %s22_s9 }
  0x12   :  { %p2328_p5 = scmp.ne.s32.totalorder %s22_s9, %s2327_s10  ;;  %p2333_p7 = scmp.lt.s32.totalorder %s2327_s10, %s2327_s10 }
  0x14   :  { %p2334_p8 = por %p2333_p7, %p2332_p6 }
  0x16   :  { %p2335_p9 = pnand %p2334_p8, %p2328_p5 }
  0x18   :  { %2338 = shalt.err (!%p2335_p9)
}
  0x19   :  { %s2411_s11 = smov 128   ;;  %s2412_s12 = smov 8  }
  0x1a   :  { %27 = dma.hbm_to_vmem [thread:$0]  %s2993_s0, 4096, %s22_s9, [#allocation3], %s2411_s11, %s2411_s11, %s2412_s12  }
  0x1b   :  { %s2413_s1 = smov [#allocation7]   ;;  %s2414_s16 = smov [#allocation8]  }
  0x1c   :  { %s47_s15 = sshll.u32 %s2413_s1, 4  ;;  %s61_s17 = sshll.u32 %s2414_s16, 4  ;;  %s48_s15 = int_to_ptr.vmem [resolvable:$true] %s47_s15  ;;  %s62_s17 = int_to_ptr.vmem [resolvable:$true] %s61_s17 }
  0x1d   :  { %s2347_s18 = scalar_lea.vmem %s48_s15, 1024  ;;  %p2352_p11 = scmp.lt.s32.totalorder %s48_s15, %s48_s15 }
  0x1e   :  { %p2348_p10 = scmp.ne.s32.totalorder %s48_s15, %s2347_s18  ;;  %p2353_p12 = scmp.lt.s32.totalorder %s2347_s18, %s2347_s18 }
  0x20   :  { %p2354_p13 = por %p2353_p12, %p2352_p11 }
  0x22   :  { %p2355_p0 = pnand %p2354_p13, %p2348_p10 }
  0x24   :  { %2358 = shalt.err (!%p2355_p0)
}
  0x25   :  { %53 = dma.hbm_to_vmem [thread:$0]  %s2996_s3, 1024, %s48_s15, [#allocation6], %s2408_s27, %s2408_s27, %s2409_s28  }
  0x26   :  { %s2367_s0 = scalar_lea.vmem %s62_s17, 1024  ;;  %p2372_p2 = scmp.lt.s32.totalorder %s62_s17, %s62_s17 }
  0x27   :  { %p2368_p1 = scmp.ne.s32.totalorder %s62_s17, %s2367_s0  ;;  %p2373_p3 = scmp.lt.s32.totalorder %s2367_s0, %s2367_s0 }
  0x29   :  { %p2374_p4 = por %p2373_p3, %p2372_p2 }
  0x2b   :  { %p2375_p5 = pnand %p2374_p4, %p2368_p1 }
  0x2d   :  { %2378 = shalt.err (!%p2375_p5)
}
  0x2e   :  { %67 = dma.hbm_to_vmem [thread:$0]  %s2998_s5, 1024, %s62_s17, [#allocation9], %s2408_s27, %s2408_s27, %s2409_s28  }
  0x2f   :  { %2399 = dma.done.wait [#allocation3], 4096  }
  0x30   :  { %2400 = vsyncadd [#allocation3], 4294963200 }
  0x31   :  { %2401 = dma.done.wait [#allocation6], 3072  }
  0x32   :  { %2402 = vsyncadd [#allocation6], 4294964224 }
  0x33   :  { %2403 = dma.done.wait [#allocation9], 1024  }
  0x34   :  { %2404 = vsyncadd [#allocation9], 4294966272  ;;  %v2091_v0 = vld [vmem:[#allocation5 + $0x78] sm:$0xff]   ;;  %v2093_v2 = vld [vmem:[#allocation5 + $0x70] sm:$0xff]  }
  0x35   :  { %v2092_v1 = vld [vmem:[#allocation5 + $0x38] sm:$0xff]   ;;  %1714 = vmatprep.subr.bf16.mxu0 %v2091_v0  ;;  %v2094_v3 = vld [vmem:[#allocation5 + $0x30] sm:$0xff]   ;;  %v2095_v4 = vld [vmem:[#allocation5 + $0x68] sm:$0xff]  }
  0x36   :  { %1715 = vmatpush3.bf16.msra.mxu0 %v2092_v1  ;;  %v2096_v5 = vld [vmem:[#allocation5 + $0x28] sm:$0xff]   ;;  %v2097_v6 = vld [vmem:[#allocation5 + $0x60] sm:$0xff]   ;;  %v2099_v8 = vld [vmem:[#allocation5 + $0x58] sm:$0xff]  }
  0x37   :  { %1716 = vmatprep.subr.bf16.mxu0 %v2093_v2  ;;  %v2098_v7 = vld [vmem:[#allocation5 + $0x20] sm:$0xff]   ;;  %v2100_v9 = vld [vmem:[#allocation5 + $0x18] sm:$0xff]   ;;  %v2101_v10 = vld [vmem:[#allocation5 + $0x50] sm:$0xff]  }
  0x38   :  { %v2480_v11 = vld [vmem:[#allocation2 + $0x4] ss:$8 sps:$4 sm:$0xff]   ;;  %v2102_v12 = vld [vmem:[#allocation5 + $0x10] sm:$0xff]   ;;  %v2483_v17 = vld [vmem:[#allocation2] ss:$8 sps:$4 sm:$0xff]  }
  0x39   :  { %442 = vmatprep.mubr.bf16.mxu0 %v2480_v11  ;;  %v2103_v13 = vld [vmem:[#allocation5 + $0x48] sm:$0xff]   ;;  %v2105_v15 = vld [vmem:[#allocation5 + $0x40] sm:$0xff]   ;;  %v2485_v18 = vld [vmem:[#allocation2 + $0x14] ss:$8 sps:$4 sm:$0xff]  }
  0x3a   :  { %1717 = vmatpush3.bf16.msra.mxu0 %v2094_v3  ;;  %v2104_v14 = vld [vmem:[#allocation5 + $0x8] sm:$0xff]   ;;  %v2106_v16 = vld [vmem:[#allocation5] sm:$0xff]   ;;  %v2489_v19 = vld [vmem:[#allocation2 + $0x10] ss:$8 sps:$4 sm:$0xff]  }
  0x3b   :  { %1718 = vmatprep.subr.bf16.mxu0 %v2095_v4  ;;  %v2491_v20 = vld [vmem:[#allocation2 + $0x24] ss:$8 sps:$4 sm:$0xff]   ;;  %v2155_v21 = vld [vmem:[#allocation7 + $0x38] sm:$0xff]   ;;  %v2156_v22 = vld [vmem:[#allocation7 + $0x30] sm:$0xff]  }
  0x3c   :  { %1986 = vmatprep.subr.bf16.mxu1 %v2155_v21  ;;  %v2157_v23 = vld [vmem:[#allocation7 + $0x28] sm:$0xff]   ;;  %v2497_v25 = vld [vmem:[#allocation2 + $0x34] ss:$8 sps:$4 sm:$0xff]   ;;  %v2501_v26 = vld [vmem:[#allocation2 + $0x30] ss:$8 sps:$4 sm:$0xff]  }
  0x3d   :  { %1987 = vmatpush3.bf16.msra.mxu1 %v2155_v21  ;;  %v2495_v24 = vld [vmem:[#allocation2 + $0x20] ss:$8 sps:$4 sm:$0xff]   ;;  %v2503_v27 = vld [vmem:[#allocation2 + $0x44] ss:$8 sps:$4 sm:$0xff]   ;;  %v2509_v29 = vld [vmem:[#allocation2 + $0x54] ss:$8 sps:$4 sm:$0xff]  }
  0x3e   :  { %1719 = vmatpush3.bf16.msra.mxu0 %v2096_v5  ;;  %1988 = vmatprep.subr.bf16.mxu1 %v2156_v22  ;;  %v2507_v28 = vld [vmem:[#allocation2 + $0x40] ss:$8 sps:$4 sm:$0xff]   ;;  %v2513_v30 = vld [vmem:[#allocation2 + $0x50] ss:$8 sps:$4 sm:$0xff]   ;;  %v2515_v31 = vld [vmem:[#allocation2 + $0x64] ss:$8 sps:$4 sm:$0xff]  }
  0x3f   :  { %1720 = vmatprep.subr.bf16.mxu0 %v2097_v6  ;;  %v2519_v32 = vld [vmem:[#allocation2 + $0x60] ss:$8 sps:$4 sm:$0xff]   ;;  %v2521_v33 = vld [vmem:[#allocation2 + $0x74] ss:$8 sps:$4 sm:$0xff]   ;;  %v2525_v34 = vld [vmem:[#allocation2 + $0x70] ss:$8 sps:$4 sm:$0xff]  }
  0x40   :  { %v2527_v35 = vld [vmem:[#allocation2 + $0x84] ss:$8 sps:$4 sm:$0xff]   ;;  %v2531_v36 = vld [vmem:[#allocation2 + $0x80] ss:$8 sps:$4 sm:$0xff]   ;;  %v2533_v37 = vld [vmem:[#allocation2 + $0x94] ss:$8 sps:$4 sm:$0xff]  }
  0x41   :  { %1989 = vmatpush3.bf16.msra.mxu1 %v2156_v22  ;;  %v2158_v38 = vld [vmem:[#allocation7 + $0x20] sm:$0xff]   ;;  %v2537_v39 = vld [vmem:[#allocation2 + $0x90] ss:$8 sps:$4 sm:$0xff]   ;;  %v2545_v44 = vld [vmem:[#allocation2 + $0xb4] ss:$8 sps:$4 sm:$0xff]  }
  0x42   :  { %1721 = vmatpush3.bf16.msra.mxu0 %v2098_v7  ;;  %1990 = vmatprep.subr.bf16.mxu1 %v2157_v23  ;;  %v2539_v40 = vld [vmem:[#allocation2 + $0xa4] ss:$8 sps:$4 sm:$0xff]   ;;  %v2159_v41 = vld [vmem:[#allocation7 + $0x18] sm:$0xff]   ;;  %v2160_v42 = vld [vmem:[#allocation7 + $0x10] sm:$0xff]  }
  0x43   :  { %1722 = vmatprep.subr.bf16.mxu0 %v2099_v8  ;;  %v2543_v43 = vld [vmem:[#allocation2 + $0xa0] ss:$8 sps:$4 sm:$0xff]   ;;  %v2549_v47 = vld [vmem:[#allocation2 + $0xb0] ss:$8 sps:$4 sm:$0xff]   ;;  %v2551_v48 = vld [vmem:[#allocation2 + $0xc4] ss:$8 sps:$4 sm:$0xff]  }
  0x44   :  { %v2161_v45 = vld [vmem:[#allocation7 + $0x8] sm:$0xff]   ;;  %v2162_v46 = vld [vmem:[#allocation7] sm:$0xff]   ;;  %v2557_v50 = vld [vmem:[#allocation2 + $0xd4] ss:$8 sps:$4 sm:$0xff]  }
  0x45   :  { %1991 = vmatpush3.bf16.msra.mxu1 %v2157_v23  ;;  %v2555_v49 = vld [vmem:[#allocation2 + $0xc0] ss:$8 sps:$4 sm:$0xff]   ;;  %3007 = vst [vmem:[#allocation15_spill] sm:$0xff] %v2557_v50  ;;  %v2561_v51 = vld [vmem:[#allocation2 + $0xd0] ss:$8 sps:$4 sm:$0xff]  }
  0x46   :  { %1723 = vmatpush3.bf16.msra.mxu0 %v2100_v9  ;;  %1992 = vmatprep.subr.bf16.mxu1 %v2158_v38  ;;  %3008 = vst [vmem:[#allocation16_spill] sm:$0xff] %v2561_v51  ;;  %v2563_v52 = vld [vmem:[#allocation2 + $0xe4] ss:$8 sps:$4 sm:$0xff]   ;;  %v2567_v53 = vld [vmem:[#allocation2 + $0xe0] ss:$8 sps:$4 sm:$0xff]  }
  0x47   :  { %1724 = vmatprep.subr.bf16.mxu0 %v2101_v10  ;;  %3009 = vst [vmem:[#allocation17_spill] sm:$0xff] %v2563_v52  ;;  %3010 = vst [vmem:[#allocation18_spill] sm:$0xff] %v2567_v53  ;;  %v2569_v54 = vld [vmem:[#allocation2 + $0xf4] ss:$8 sps:$4 sm:$0xff]   ;;  %v2573_v55 = vld [vmem:[#allocation2 + $0xf0] ss:$8 sps:$4 sm:$0xff]  }
  0x48   :  { %3011 = vst [vmem:[#allocation19_spill] sm:$0xff] %v2569_v54  ;;  %3012 = vst [vmem:[#allocation20_spill] sm:$0xff] %v2573_v55  ;;  %v2579_v60 = vld [vmem:[%s2995_s2] ss:$0 sm:$0xff] }
  0x49   :  { %1993 = vmatpush3.bf16.msra.mxu1 %v2158_v38 }
  0x4a   :  { %1725 = vmatpush3.bf16.msra.mxu0 %v2102_v12  ;;  %1994 = vmatprep.subr.bf16.mxu1 %v2159_v41 }
  0x4b   :  { %1726 = vmatprep.subr.bf16.mxu0 %v2103_v13 }
  0x4d   :  { %1995 = vmatpush3.bf16.msra.mxu1 %v2159_v41 }
  0x4e   :  { %1727 = vmatpush3.bf16.msra.mxu0 %v2104_v14  ;;  %1996 = vmatprep.subr.bf16.mxu1 %v2160_v42 }
  0x4f   :  { %1728 = vmatprep.subr.bf16.mxu0 %v2105_v15 }
  0x51   :  { %1997 = vmatpush3.bf16.msra.mxu1 %v2160_v42 }
  0x52   :  { %1729 = vmatpush3.bf16.msra.mxu0 %v2106_v16  ;;  %1998 = vmatprep.subr.bf16.mxu1 %v2161_v45 }
  0x55   :  { %443 = vmatmul.mubr.bf16.vlgmr.msra.gmra.mxu0 %v2483_v17  ;;  %1999 = vmatpush3.bf16.msra.mxu1 %v2161_v45 }
  0x56   :  { %450 = vmatprep.mubr.bf16.mxu0 %v2485_v18  ;;  %2000 = vmatprep.subr.bf16.mxu1 %v2162_v46 }
  0x59   :  { %2001 = vmatpush3.bf16.msra.mxu1 %v2162_v46 }
  0x5d   :  { %451 = vmatmul.mubr.bf16.gmra.mxu0 %v2489_v19 }
  0x5e   :  { %458 = vmatprep.mubr.bf16.mxu0 %v2491_v20 }
  0x65   :  { %459 = vmatmul.mubr.bf16.gmra.mxu0 %v2495_v24 }
  0x66   :  { %466 = vmatprep.mubr.bf16.mxu0 %v2497_v25 }
  0x6d   :  { %467 = vmatmul.mubr.bf16.gmra.mxu0 %v2501_v26 }
  0x6e   :  { %474 = vmatprep.mubr.bf16.mxu0 %v2503_v27 }
  0x75   :  { %475 = vmatmul.mubr.bf16.gmra.mxu0 %v2507_v28 }
  0x76   :  { %482 = vmatprep.mubr.bf16.mxu0 %v2509_v29 }
  0x7d   :  { %483 = vmatmul.mubr.bf16.gmra.mxu0 %v2513_v30 }
  0x7e   :  { %490 = vmatprep.mubr.bf16.mxu0 %v2515_v31 }
  0x85   :  { %491 = vmatmul.mubr.bf16.gmra.mxu0 %v2519_v32 }
  0x86   :  { %498 = vmatprep.mubr.bf16.mxu0 %v2521_v33 }
  0x8d   :  { %499 = vmatmul.mubr.bf16.gmra.mxu0 %v2525_v34 }
  0x8e   :  { %506 = vmatprep.mubr.bf16.mxu0 %v2527_v35 }
  0x95   :  { %507 = vmatmul.mubr.bf16.gmra.mxu0 %v2531_v36 }
  0x96   :  { %514 = vmatprep.mubr.bf16.mxu0 %v2533_v37 }
  0x9d   :  { %515 = vmatmul.mubr.bf16.gmra.mxu0 %v2537_v39 }
  0x9e   :  { %522 = vmatprep.mubr.bf16.mxu0 %v2539_v40 }
  0xa5   :  { %523 = vmatmul.mubr.bf16.gmra.mxu0 %v2543_v43 }
  0xa6   :  { %530 = vmatprep.mubr.bf16.mxu0 %v2545_v44 }
  0xad   :  { %531 = vmatmul.mubr.bf16.gmra.mxu0 %v2549_v47 }
  0xae   :  { %538 = vmatprep.mubr.bf16.mxu0 %v2551_v48 }
  0xb5   :  { %539 = vmatmul.mubr.bf16.gmra.mxu0 %v2555_v49 }
  0xb6   :  { %546 = vmatprep.mubr.bf16.mxu0 %v2557_v50 }
  0xbd   :  { %547 = vmatmul.mubr.bf16.gmra.mxu0 %v2561_v51 }
  0xbe   :  { %554 = vmatprep.mubr.bf16.mxu0 %v2563_v52 }
  0xc5   :  { %555 = vmatmul.mubr.bf16.gmra.mxu0 %v2567_v53 }
  0xc6   :  { %562 = vmatprep.mubr.bf16.mxu0 %v2569_v54 }
  0xcd   :  { %563 = vmatmul.mubr.bf16.gmra.mxu0 %v2573_v55 }
 0x115   :  { %v1730_v56 = vpop.f32.mrf.mxu0 }
 0x117   :  { %v1731_v57 = vpop.f32.mrf.mxu0 }
 0x118   :  { %v1732_v58 = vadd.f32 %v1731_v57, %v1730_v56 }
 0x119   :  { %v1733_v59 = vpop.f32.mrf.mxu0 }
 0x11a   :  { %v445_v63 = vadd.f32 %v1732_v58, %v2579_v60 }
 0x11b   :  { %v1734_v61 = vpop.f32.mrf.mxu0 }
 0x11c   :  { %v1735_v62 = vadd.f32 %v1734_v61, %v1733_v59  ;;  %v571_v4 = vmax.f32 %v445_v63, 0.0 }
 0x11d   :  { %v1736_v0 = vpop.f32.mrf.mxu0 }
 0x11e   :  { %v448_v1 = vadd.f32 %v1735_v62, %v2579_v60 }
 0x11f   :  { %v1737_v2 = vpop.f32.mrf.mxu0 }
 0x120   :  { %v1738_v3 = vadd.f32 %v1737_v2, %v1736_v0  ;;  %v572_v5 = vmax.f32 %v448_v1, 0.0 }
 0x121   :  { %v1739_v6 = vpop.f32.mrf.mxu0 }
 0x122   :  { %v603_v7 = vpack.c.bf16 %v572_v5, %v571_v4  ;;  %v453_v9 = vadd.f32 %v1738_v3, %v2579_v60 }
 0x123   :  { %v1740_v8 = vpop.f32.mrf.mxu0 }
 0x124   :  { %v1741_v10 = vadd.f32 %v1740_v8, %v1739_v6  ;;  %2002 = vmatprep.mubr.bf16.mxu1 %v603_v7  ;;  %v573_v15 = vmax.f32 %v453_v9, 0.0 }
 0x125   :  { %v1742_v12 = vpop.f32.mrf.mxu0 }
 0x126   :  { %v456_v13 = vadd.f32 %v1741_v10, %v2579_v60 }
 0x127   :  { %v1743_v14 = vpop.f32.mrf.mxu0 }
 0x128   :  { %v574_v16 = vmax.f32 %v456_v13, 0.0  ;;  %v1744_v21 = vadd.f32 %v1743_v14, %v1742_v12 }
 0x129   :  { %v1745_v22 = vpop.f32.mrf.mxu0 }
 0x12a   :  { %v604_v23 = vpack.c.bf16 %v574_v16, %v573_v15  ;;  %v461_v41 = vadd.f32 %v1744_v21, %v2579_v60 }
 0x12b   :  { %v1746_v38 = vpop.f32.mrf.mxu0 }
 0x12c   :  { %v1747_v42 = vadd.f32 %v1746_v38, %v1745_v22  ;;  %2003 = vmatmul.mubr.bf16.vlgmr.msra.gmra.mxu1 %v604_v23  ;;  %v575_v57 = vmax.f32 %v461_v41, 0.0 }
 0x12d   :  { %v1748_v45 = vpop.f32.mrf.mxu0 }
 0x12e   :  { %v464_v46 = vadd.f32 %v1747_v42, %v2579_v60 }
 0x12f   :  { %v1749_v56 = vpop.f32.mrf.mxu0 }
 0x130   :  { %v576_v58 = vmax.f32 %v464_v46, 0.0  ;;  %v1750_v59 = vadd.f32 %v1749_v56, %v1748_v45 }
 0x131   :  { %v1751_v61 = vpop.f32.mrf.mxu0 }
 0x132   :  { %v605_v62 = vpack.c.bf16 %v576_v58, %v575_v57  ;;  %v469_v0 = vadd.f32 %v1750_v59, %v2579_v60 }
 0x133   :  { %v1752_v63 = vpop.f32.mrf.mxu0 }
 0x134   :  { %v1753_v1 = vadd.f32 %v1752_v63, %v1751_v61  ;;  %2006 = vmatprep.mubr.bf16.mxu1 %v605_v62  ;;  %v577_v5 = vmax.f32 %v469_v0, 0.0 }
 0x135   :  { %v1754_v2 = vpop.f32.mrf.mxu0 }
 0x136   :  { %v472_v3 = vadd.f32 %v1753_v1, %v2579_v60 }
 0x137   :  { %v1755_v4 = vpop.f32.mrf.mxu0 }
 0x138   :  { %v578_v6 = vmax.f32 %v472_v3, 0.0  ;;  %v1756_v7 = vadd.f32 %v1755_v4, %v1754_v2 }
 0x139   :  { %v1757_v8 = vpop.f32.mrf.mxu0 }
 0x13a   :  { %v606_v9 = vpack.c.bf16 %v578_v6, %v577_v5  ;;  %v477_v12 = vadd.f32 %v1756_v7, %v2579_v60 }
 0x13b   :  { %v1758_v10 = vpop.f32.mrf.mxu0 }
 0x13c   :  { %v1759_v13 = vadd.f32 %v1758_v10, %v1757_v8  ;;  %2007 = vmatmul.mubr.bf16.gmra.mxu1 %v606_v9  ;;  %v579_v21 = vmax.f32 %v477_v12, 0.0 }
 0x13d   :  { %v1760_v14 = vpop.f32.mrf.mxu0 }
 0x13e   :  { %v480_v15 = vadd.f32 %v1759_v13, %v2579_v60 }
 0x13f   :  { %v1761_v16 = vpop.f32.mrf.mxu0 }
 0x140   :  { %v580_v22 = vmax.f32 %v480_v15, 0.0  ;;  %v1762_v23 = vadd.f32 %v1761_v16, %v1760_v14 }
 0x141   :  { %v1763_v38 = vpop.f32.mrf.mxu0 }
 0x142   :  { %v607_v41 = vpack.c.bf16 %v580_v22, %v579_v21  ;;  %v485_v45 = vadd.f32 %v1762_v23, %v2579_v60 }
 0x143   :  { %v1764_v42 = vpop.f32.mrf.mxu0 }
 0x144   :  { %v1765_v46 = vadd.f32 %v1764_v42, %v1763_v38  ;;  %2010 = vmatprep.mubr.bf16.mxu1 %v607_v41  ;;  %v581_v59 = vmax.f32 %v485_v45, 0.0 }
 0x145   :  { %v1766_v56 = vpop.f32.mrf.mxu0 }
 0x146   :  { %v488_v57 = vadd.f32 %v1765_v46, %v2579_v60 }
 0x147   :  { %v1767_v58 = vpop.f32.mrf.mxu0 }
 0x148   :  { %v582_v61 = vmax.f32 %v488_v57, 0.0  ;;  %v1768_v62 = vadd.f32 %v1767_v58, %v1766_v56 }
 0x149   :  { %v1769_v63 = vpop.f32.mrf.mxu0 }
 0x14a   :  { %v608_v0 = vpack.c.bf16 %v582_v61, %v581_v59  ;;  %v493_v2 = vadd.f32 %v1768_v62, %v2579_v60 }
 0x14b   :  { %v1770_v1 = vpop.f32.mrf.mxu0 }
 0x14c   :  { %v1771_v3 = vadd.f32 %v1770_v1, %v1769_v63  ;;  %2011 = vmatmul.mubr.bf16.gmra.mxu1 %v608_v0  ;;  %v583_v7 = vmax.f32 %v493_v2, 0.0 }
 0x14d   :  { %v1772_v4 = vpop.f32.mrf.mxu0 }
 0x14e   :  { %v496_v5 = vadd.f32 %v1771_v3, %v2579_v60 }
 0x14f   :  { %v1773_v6 = vpop.f32.mrf.mxu0 }
 0x150   :  { %v584_v8 = vmax.f32 %v496_v5, 0.0  ;;  %v1774_v9 = vadd.f32 %v1773_v6, %v1772_v4 }
 0x151   :  { %v1775_v10 = vpop.f32.mrf.mxu0 }
 0x152   :  { %v609_v12 = vpack.c.bf16 %v584_v8, %v583_v7  ;;  %v501_v14 = vadd.f32 %v1774_v9, %v2579_v60 }
 0x153   :  { %v1776_v13 = vpop.f32.mrf.mxu0 }
 0x154   :  { %v1777_v15 = vadd.f32 %v1776_v13, %v1775_v10  ;;  %2014 = vmatprep.mubr.bf16.mxu1 %v609_v12  ;;  %v585_v23 = vmax.f32 %v501_v14, 0.0 }
 0x155   :  { %v1778_v16 = vpop.f32.mrf.mxu0 }
 0x156   :  { %v504_v21 = vadd.f32 %v1777_v15, %v2579_v60 }
 0x157   :  { %v1779_v22 = vpop.f32.mrf.mxu0 }
 0x158   :  { %v586_v38 = vmax.f32 %v504_v21, 0.0  ;;  %v1780_v41 = vadd.f32 %v1779_v22, %v1778_v16 }
 0x159   :  { %v1781_v42 = vpop.f32.mrf.mxu0 }
 0x15a   :  { %v610_v45 = vpack.c.bf16 %v586_v38, %v585_v23  ;;  %v509_v56 = vadd.f32 %v1780_v41, %v2579_v60 }
 0x15b   :  { %v1782_v46 = vpop.f32.mrf.mxu0 }
 0x15c   :  { %v1783_v57 = vadd.f32 %v1782_v46, %v1781_v42  ;;  %2015 = vmatmul.mubr.bf16.gmra.mxu1 %v610_v45  ;;  %v587_v62 = vmax.f32 %v509_v56, 0.0 }
 0x15d   :  { %v1784_v58 = vpop.f32.mrf.mxu0 }
 0x15e   :  { %v512_v59 = vadd.f32 %v1783_v57, %v2579_v60 }
 0x15f   :  { %v1785_v61 = vpop.f32.mrf.mxu0 }
 0x160   :  { %v588_v63 = vmax.f32 %v512_v59, 0.0  ;;  %v1786_v0 = vadd.f32 %v1785_v61, %v1784_v58 }
 0x161   :  { %v1787_v1 = vpop.f32.mrf.mxu0 }
 0x162   :  { %v611_v2 = vpack.c.bf16 %v588_v63, %v587_v62  ;;  %v517_v4 = vadd.f32 %v1786_v0, %v2579_v60 }
 0x163   :  { %v1788_v3 = vpop.f32.mrf.mxu0 }
 0x164   :  { %v1789_v5 = vadd.f32 %v1788_v3, %v1787_v1  ;;  %2018 = vmatprep.mubr.bf16.mxu1 %v611_v2  ;;  %v589_v9 = vmax.f32 %v517_v4, 0.0 }
 0x165   :  { %v1790_v6 = vpop.f32.mrf.mxu0 }
 0x166   :  { %v520_v7 = vadd.f32 %v1789_v5, %v2579_v60 }
 0x167   :  { %v1791_v8 = vpop.f32.mrf.mxu0 }
 0x168   :  { %v590_v10 = vmax.f32 %v520_v7, 0.0  ;;  %v1792_v12 = vadd.f32 %v1791_v8, %v1790_v6 }
 0x169   :  { %v1793_v13 = vpop.f32.mrf.mxu0 }
 0x16a   :  { %v612_v14 = vpack.c.bf16 %v590_v10, %v589_v9  ;;  %v525_v16 = vadd.f32 %v1792_v12, %v2579_v60 }
 0x16b   :  { %v1794_v15 = vpop.f32.mrf.mxu0 }
 0x16c   :  { %v1795_v21 = vadd.f32 %v1794_v15, %v1793_v13  ;;  %2019 = vmatmul.mubr.bf16.gmra.mxu1 %v612_v14  ;;  %v591_v41 = vmax.f32 %v525_v16, 0.0 }
 0x16d   :  { %v1796_v22 = vpop.f32.mrf.mxu0 }
 0x16e   :  { %v528_v23 = vadd.f32 %v1795_v21, %v2579_v60 }
 0x16f   :  { %v1797_v38 = vpop.f32.mrf.mxu0 }
 0x170   :  { %v592_v42 = vmax.f32 %v528_v23, 0.0  ;;  %v1798_v45 = vadd.f32 %v1797_v38, %v1796_v22 }
 0x171   :  { %v1799_v46 = vpop.f32.mrf.mxu0 }
 0x172   :  { %v613_v56 = vpack.c.bf16 %v592_v42, %v591_v41  ;;  %v533_v58 = vadd.f32 %v1798_v45, %v2579_v60 }
 0x173   :  { %v1800_v57 = vpop.f32.mrf.mxu0 }
 0x174   :  { %v1801_v59 = vadd.f32 %v1800_v57, %v1799_v46  ;;  %2022 = vmatprep.mubr.bf16.mxu1 %v613_v56  ;;  %v593_v0 = vmax.f32 %v533_v58, 0.0 }
 0x175   :  { %v1802_v61 = vpop.f32.mrf.mxu0 }
 0x176   :  { %v536_v62 = vadd.f32 %v1801_v59, %v2579_v60 }
 0x177   :  { %v1803_v63 = vpop.f32.mrf.mxu0 }
 0x178   :  { %v594_v1 = vmax.f32 %v536_v62, 0.0  ;;  %v1804_v2 = vadd.f32 %v1803_v63, %v1802_v61 }
 0x179   :  { %v1805_v3 = vpop.f32.mrf.mxu0 }
 0x17a   :  { %v614_v4 = vpack.c.bf16 %v594_v1, %v593_v0  ;;  %v541_v6 = vadd.f32 %v1804_v2, %v2579_v60 }
 0x17b   :  { %v1806_v5 = vpop.f32.mrf.mxu0 }
 0x17c   :  { %v1807_v7 = vadd.f32 %v1806_v5, %v1805_v3  ;;  %2023 = vmatmul.mubr.bf16.gmra.mxu1 %v614_v4  ;;  %v595_v12 = vmax.f32 %v541_v6, 0.0 }
 0x17d   :  { %v1808_v8 = vpop.f32.mrf.mxu0 }
 0x17e   :  { %v544_v9 = vadd.f32 %v1807_v7, %v2579_v60 }
 0x17f   :  { %v1809_v10 = vpop.f32.mrf.mxu0 }
 0x180   :  { %v596_v13 = vmax.f32 %v544_v9, 0.0  ;;  %v1810_v14 = vadd.f32 %v1809_v10, %v1808_v8 }
 0x181   :  { %v1811_v15 = vpop.f32.mrf.mxu0 }
 0x182   :  { %v615_v16 = vpack.c.bf16 %v596_v13, %v595_v12  ;;  %v549_v22 = vadd.f32 %v1810_v14, %v2579_v60 }
 0x183   :  { %v1812_v21 = vpop.f32.mrf.mxu0 }
 0x184   :  { %v1813_v23 = vadd.f32 %v1812_v21, %v1811_v15  ;;  %2026 = vmatprep.mubr.bf16.mxu1 %v615_v16  ;;  %v597_v45 = vmax.f32 %v549_v22, 0.0 }
 0x185   :  { %v1814_v38 = vpop.f32.mrf.mxu0 }
 0x186   :  { %v552_v41 = vadd.f32 %v1813_v23, %v2579_v60 }
 0x187   :  { %v1815_v42 = vpop.f32.mrf.mxu0 }
 0x188   :  { %v598_v46 = vmax.f32 %v552_v41, 0.0  ;;  %v1816_v56 = vadd.f32 %v1815_v42, %v1814_v38 }
 0x189   :  { %v1817_v57 = vpop.f32.mrf.mxu0 }
 0x18a   :  { %v616_v58 = vpack.c.bf16 %v598_v46, %v597_v45  ;;  %v557_v61 = vadd.f32 %v1816_v56, %v2579_v60 }
 0x18b   :  { %v1818_v59 = vpop.f32.mrf.mxu0 }
 0x18c   :  { %v1819_v62 = vadd.f32 %v1818_v59, %v1817_v57  ;;  %2027 = vmatmul.mubr.bf16.gmra.mxu1 %v616_v58  ;;  %v599_v2 = vmax.f32 %v557_v61, 0.0 }
 0x18d   :  { %v1820_v63 = vpop.f32.mrf.mxu0 }
 0x18e   :  { %v560_v0 = vadd.f32 %v1819_v62, %v2579_v60 }
 0x18f   :  { %v1821_v1 = vpop.f32.mrf.mxu0 }
 0x190   :  { %v600_v3 = vmax.f32 %v560_v0, 0.0  ;;  %v1822_v4 = vadd.f32 %v1821_v1, %v1820_v63 }
 0x191   :  { %v1823_v5 = vpop.f32.mrf.mxu0 }
 0x192   :  { %v617_v6 = vpack.c.bf16 %v600_v3, %v599_v2  ;;  %v565_v8 = vadd.f32 %v1822_v4, %v2579_v60 }
 0x193   :  { %v1824_v7 = vpop.f32.mrf.mxu0 }
 0x194   :  { %v1825_v9 = vadd.f32 %v1824_v7, %v1823_v5  ;;  %2030 = vmatprep.mubr.bf16.mxu1 %v617_v6  ;;  %v601_v12 = vmax.f32 %v565_v8, 0.0 }
 0x196   :  { %v568_v10 = vadd.f32 %v1825_v9, %v2579_v60 }
 0x198   :  { %v602_v13 = vmax.f32 %v568_v10, 0.0 }
 0x19a   :  { %v618_v14 = vpack.c.bf16 %v602_v13, %v601_v12 }
 0x19c   :  { %2031 = vmatmul.mubr.bf16.gmra.mxu1 %v618_v14 }
 0x19d   :  { %899 = vmatprep.mubr.bf16.mxu1 %v2480_v11 }
 0x1ec   :  { %v2614_v15 = vpop.f32.mrf.mxu1 }
 0x1ee   :  { %v2616_v16 = vpop.f32.mrf.mxu1 }
 0x1f0   :  { %v2005_v21 = vpop.f32.mrf.mxu1 }
 0x1f1   :  { %v845_v22 = vpack.c.bf16 %v2005_v21, %v2614_v15 }
 0x1f2   :  { %v2619_v23 = vpop.f32.mrf.mxu1 }
 0x1fc   :  { %v2008_v41 = vpop.f32.mrf.mxu1 }
 0x1fe   :  { %v733_v60 = vpop.f32.mrf.mxu1 }
 0x200   :  { %v2009_v42 = vpop.f32.mrf.mxu1 }
 0x201   :  { %v847_v45 = vpack.c.bf16 %v2009_v42, %v2008_v41 }
 0x202   :  { %v736_v46 = vpop.f32.mrf.mxu1 }
 0x203   :  { %v846_v56 = vpack.c.bf16 %v736_v46, %v733_v60 }
 0x20c   :  { %v2012_v57 = vpop.f32.mrf.mxu1 }
 0x20e   :  { %v749_v11 = vpop.f32.mrf.mxu1 }
 0x210   :  { %v2013_v58 = vpop.f32.mrf.mxu1 }
 0x211   :  { %v849_v54 = vpack.c.bf16 %v2013_v58, %v2012_v57 }
 0x212   :  { %v752_v59 = vpop.f32.mrf.mxu1 }
 0x213   :  { %v848_v52 = vpack.c.bf16 %v752_v59, %v749_v11 }
 0x21c   :  { %v2016_v61 = vpop.f32.mrf.mxu1 }
 0x21e   :  { %v765_v62 = vpop.f32.mrf.mxu1 }
 0x220   :  { %v2017_v63 = vpop.f32.mrf.mxu1 }
 0x221   :  { %v851_v60 = vpack.c.bf16 %v2017_v63, %v2016_v61 }
 0x222   :  { %v768_v0 = vpop.f32.mrf.mxu1 }
 0x223   :  { %v850_v38 = vpack.c.bf16 %v768_v0, %v765_v62  ;;  %v2164_v62 = vld [vmem:[#allocation8 + $0x30] sm:$0xff]  }
 0x22c   :  { %v2020_v1 = vpop.f32.mrf.mxu1 }
 0x22e   :  { %v781_v2 = vpop.f32.mrf.mxu1 }
 0x230   :  { %v2021_v3 = vpop.f32.mrf.mxu1 }
 0x231   :  { %v853_v61 = vpack.c.bf16 %v2021_v3, %v2020_v1 }
 0x232   :  { %v784_v4 = vpop.f32.mrf.mxu1 }
 0x233   :  { %v852_v63 = vpack.c.bf16 %v784_v4, %v781_v2 }
 0x23c   :  { %v2024_v5 = vpop.f32.mrf.mxu1 }
 0x23e   :  { %v797_v6 = vpop.f32.mrf.mxu1 }
 0x240   :  { %v2025_v7 = vpop.f32.mrf.mxu1 }
 0x241   :  { %v855_v51 = vpack.c.bf16 %v2025_v7, %v2024_v5 }
 0x242   :  { %v800_v8 = vpop.f32.mrf.mxu1 }
 0x243   :  { %v854_v50 = vpack.c.bf16 %v800_v8, %v797_v6 }
 0x24c   :  { %v2028_v9 = vpop.f32.mrf.mxu1 }
 0x24e   :  { %v813_v10 = vpop.f32.mrf.mxu1 }
 0x250   :  { %v2029_v12 = vpop.f32.mrf.mxu1 }
 0x251   :  { %v857_v55 = vpack.c.bf16 %v2029_v12, %v2028_v9 }
 0x252   :  { %v816_v13 = vpop.f32.mrf.mxu1 }
 0x253   :  { %v856_v53 = vpack.c.bf16 %v816_v13, %v813_v10 }
 0x25c   :  { %v2032_v14 = vpop.f32.mrf.mxu1 }
 0x25e   :  { %v829_v15 = vpop.f32.mrf.mxu1 }
 0x260   :  { %v2033_v21 = vpop.f32.mrf.mxu1 }
 0x261   :  { %v859_v41 = vpack.c.bf16 %v2033_v21, %v2032_v14  ;;  %v2163_v14 = vld [vmem:[#allocation8 + $0x38] sm:$0xff]  }
 0x262   :  { %v832_v42 = vpop.f32.mrf.mxu1  ;;  %2034 = vmatprep.subr.bf16.mxu0 %v2163_v14 }
 0x263   :  { %v858_v46 = vpack.c.bf16 %v832_v42, %v829_v15  ;;  %1850 = vmatprep.subr.bf16.mxu1 %v859_v41  ;;  %2035 = vmatpush3.bf16.msra.mxu0 %v2163_v14 }
 0x264   :  { %1851 = vmatpush3.bf16.msra.mxu1 %v851_v60  ;;  %2036 = vmatprep.subr.bf16.mxu0 %v2164_v62 }
 0x265   :  { %1852 = vmatprep.subr.bf16.mxu1 %v858_v46 }
 0x267   :  { %2037 = vmatpush3.bf16.msra.mxu0 %v2164_v62 }
 0x268   :  { %1853 = vmatpush3.bf16.msra.mxu1 %v850_v38 }
 0x269   :  { %1854 = vmatprep.subr.bf16.mxu1 %v857_v55 }
 0x26c   :  { %1855 = vmatpush3.bf16.msra.mxu1 %v849_v54  ;;  %v2165_v54 = vld [vmem:[#allocation8 + $0x28] sm:$0xff]  }
 0x26d   :  { %1856 = vmatprep.subr.bf16.mxu1 %v856_v53  ;;  %v3013_v53 = vpack.c.bf16 %v2619_v23, %v2616_v16  ;;  %2038 = vmatprep.subr.bf16.mxu0 %v2165_v54 }
 0x26e   :  { %2039 = vmatpush3.bf16.msra.mxu0 %v2165_v54 }
 0x270   :  { %1857 = vmatpush3.bf16.msra.mxu1 %v848_v52 }
 0x271   :  { %1858 = vmatprep.subr.bf16.mxu1 %v855_v51 }
 0x274   :  { %1859 = vmatpush3.bf16.msra.mxu1 %v847_v45 }
 0x275   :  { %1860 = vmatprep.subr.bf16.mxu1 %v854_v50 }
 0x278   :  { %1861 = vmatpush3.bf16.msra.mxu1 %v846_v56 }
 0x279   :  { %1862 = vmatprep.subr.bf16.mxu1 %v853_v61 }
 0x27c   :  { %1863 = vmatpush3.bf16.msra.mxu1 %v845_v22 }
 0x27d   :  { %1864 = vmatprep.subr.bf16.mxu1 %v852_v63 }
 0x280   :  { %1865 = vmatpush3.bf16.msra.mxu1 %v3013_v53 }
 0x283   :  { %900 = vmatmul.mubr.bf16.vlgmr.msra.gmra.mxu1 %v2483_v17  ;;  %v2166_v17 = vld [vmem:[#allocation8 + $0x20] sm:$0xff]  }
 0x284   :  { %907 = vmatprep.mubr.bf16.mxu1 %v2485_v18  ;;  %2040 = vmatprep.subr.bf16.mxu0 %v2166_v17  ;;  %v2167_v18 = vld [vmem:[#allocation8 + $0x18] sm:$0xff]  }
 0x285   :  { %2041 = vmatpush3.bf16.msra.mxu0 %v2166_v17 }
 0x286   :  { %2042 = vmatprep.subr.bf16.mxu0 %v2167_v18 }
 0x289   :  { %2043 = vmatpush3.bf16.msra.mxu0 %v2167_v18 }
 0x28b   :  { %908 = vmatmul.mubr.bf16.gmra.mxu1 %v2489_v19  ;;  %v2168_v19 = vld [vmem:[#allocation8 + $0x10] sm:$0xff]  }
 0x28c   :  { %915 = vmatprep.mubr.bf16.mxu1 %v2491_v20  ;;  %2044 = vmatprep.subr.bf16.mxu0 %v2168_v19  ;;  %v2169_v20 = vld [vmem:[#allocation8 + $0x8] sm:$0xff]  }
 0x28d   :  { %2045 = vmatpush3.bf16.msra.mxu0 %v2168_v19 }
 0x28e   :  { %2046 = vmatprep.subr.bf16.mxu0 %v2169_v20 }
 0x291   :  { %2047 = vmatpush3.bf16.msra.mxu0 %v2169_v20 }
 0x293   :  { %916 = vmatmul.mubr.bf16.gmra.mxu1 %v2495_v24  ;;  %v2170_v24 = vld [vmem:[#allocation8] sm:$0xff]  }
 0x294   :  { %923 = vmatprep.mubr.bf16.mxu1 %v2497_v25  ;;  %2048 = vmatprep.subr.bf16.mxu0 %v2170_v24  ;;  %v3014_v25 = vld [vmem:[#allocation15_spill] sm:$0xff] }
 0x295   :  { %2049 = vmatpush3.bf16.msra.mxu0 %v2170_v24 }
 0x29b   :  { %924 = vmatmul.mubr.bf16.gmra.mxu1 %v2501_v26  ;;  %v3015_v26 = vld [vmem:[#allocation16_spill] sm:$0xff] }
 0x29c   :  { %931 = vmatprep.mubr.bf16.mxu1 %v2503_v27  ;;  %v3016_v27 = vld [vmem:[#allocation17_spill] sm:$0xff] }
 0x2a3   :  { %932 = vmatmul.mubr.bf16.gmra.mxu1 %v2507_v28  ;;  %v3017_v28 = vld [vmem:[#allocation18_spill] sm:$0xff] }
 0x2a4   :  { %939 = vmatprep.mubr.bf16.mxu1 %v2509_v29  ;;  %v3018_v29 = vld [vmem:[#allocation19_spill] sm:$0xff] }
 0x2ab   :  { %940 = vmatmul.mubr.bf16.gmra.mxu1 %v2513_v30  ;;  %v3019_v30 = vld [vmem:[#allocation20_spill] sm:$0xff] }
 0x2ac   :  { %947 = vmatprep.mubr.bf16.mxu1 %v2515_v31 }
 0x2b3   :  { %948 = vmatmul.mubr.bf16.gmra.mxu1 %v2519_v32 }
 0x2b4   :  { %955 = vmatprep.mubr.bf16.mxu1 %v2521_v33 }
 0x2bb   :  { %956 = vmatmul.mubr.bf16.gmra.mxu1 %v2525_v34  ;;  %v2660_v34 = vld [vmem:[%s2997_s4] ss:$0 sm:$0xff] }
 0x2bc   :  { %963 = vmatprep.mubr.bf16.mxu1 %v2527_v35 }
 0x2c3   :  { %964 = vmatmul.mubr.bf16.gmra.mxu1 %v2531_v36 }
 0x2c4   :  { %971 = vmatprep.mubr.bf16.mxu1 %v2533_v37 }
 0x2cb   :  { %972 = vmatmul.mubr.bf16.gmra.mxu1 %v2537_v39 }
 0x2cc   :  { %979 = vmatprep.mubr.bf16.mxu1 %v2539_v40 }
 0x2d3   :  { %980 = vmatmul.mubr.bf16.gmra.mxu1 %v2543_v43 }
 0x2d4   :  { %987 = vmatprep.mubr.bf16.mxu1 %v2545_v44 }
 0x2db   :  { %988 = vmatmul.mubr.bf16.gmra.mxu1 %v2549_v47 }
 0x2dc   :  { %995 = vmatprep.mubr.bf16.mxu1 %v2551_v48 }
 0x2e3   :  { %996 = vmatmul.mubr.bf16.gmra.mxu1 %v2555_v49 }
 0x2e4   :  { %1003 = vmatprep.mubr.bf16.mxu1 %v3014_v25 }
 0x2eb   :  { %1004 = vmatmul.mubr.bf16.gmra.mxu1 %v3015_v26 }
 0x2ec   :  { %1011 = vmatprep.mubr.bf16.mxu1 %v3016_v27 }
 0x2f3   :  { %1012 = vmatmul.mubr.bf16.gmra.mxu1 %v3017_v28 }
 0x2f4   :  { %1019 = vmatprep.mubr.bf16.mxu1 %v3018_v29 }
 0x2fb   :  { %1020 = vmatmul.mubr.bf16.gmra.mxu1 %v3019_v30 }
 0x343   :  { %v1866_v31 = vpop.f32.mrf.mxu1 }
 0x345   :  { %v1867_v32 = vpop.f32.mrf.mxu1 }
 0x346   :  { %v1868_v33 = vadd.f32 %v1867_v32, %v1866_v31 }
 0x347   :  { %v1869_v35 = vpop.f32.mrf.mxu1 }
 0x348   :  { %v902_v37 = vadd.f32 %v1868_v33, %v2660_v34 }
 0x349   :  { %v1870_v36 = vpop.f32.mrf.mxu1 }
 0x34a   :  { %v1871_v39 = vadd.f32 %v1870_v36, %v1869_v35  ;;  %v1028_v47 = vmax.f32 %v902_v37, 0.0 }
 0x34b   :  { %v1872_v40 = vpop.f32.mrf.mxu1 }
 0x34c   :  { %v905_v43 = vadd.f32 %v1871_v39, %v2660_v34 }
 0x34d   :  { %v1873_v44 = vpop.f32.mrf.mxu1 }
 0x34e   :  { %v1029_v48 = vmax.f32 %v905_v43, 0.0  ;;  %v1874_v49 = vadd.f32 %v1873_v44, %v1872_v40 }
 0x34f   :  { %v1875_v50 = vpop.f32.mrf.mxu1 }
 0x350   :  { %v1060_v51 = vpack.c.bf16 %v1029_v48, %v1028_v47  ;;  %v910_v55 = vadd.f32 %v1874_v49, %v2660_v34 }
 0x351   :  { %v1876_v52 = vpop.f32.mrf.mxu1 }
 0x352   :  { %v1877_v16 = vadd.f32 %v1876_v52, %v1875_v50  ;;  %2050 = vmatprep.mubr.bf16.mxu0 %v1060_v51  ;;  %v1030_v45 = vmax.f32 %v910_v55, 0.0 }
 0x353   :  { %v1878_v22 = vpop.f32.mrf.mxu1 }
 0x354   :  { %v913_v23 = vadd.f32 %v1877_v16, %v2660_v34 }
 0x355   :  { %v1879_v38 = vpop.f32.mrf.mxu1 }
 0x356   :  { %v1031_v56 = vmax.f32 %v913_v23, 0.0  ;;  %v1880_v57 = vadd.f32 %v1879_v38, %v1878_v22 }
 0x357   :  { %v1881_v11 = vpop.f32.mrf.mxu1 }
 0x358   :  { %v1061_v58 = vpack.c.bf16 %v1031_v56, %v1030_v45  ;;  %v918_v0 = vadd.f32 %v1880_v57, %v2660_v34 }
 0x359   :  { %v1882_v59 = vpop.f32.mrf.mxu1 }
 0x35a   :  { %v1883_v1 = vadd.f32 %v1882_v59, %v1881_v11  ;;  %2051 = vmatmul.mubr.bf16.vlgmr.msra.gmra.mxu0 %v1061_v58  ;;  %v1032_v5 = vmax.f32 %v918_v0, 0.0 }
 0x35b   :  { %v1884_v2 = vpop.f32.mrf.mxu1 }
 0x35c   :  { %v921_v3 = vadd.f32 %v1883_v1, %v2660_v34 }
 0x35d   :  { %v1885_v4 = vpop.f32.mrf.mxu1 }
 0x35e   :  { %v1033_v6 = vmax.f32 %v921_v3, 0.0  ;;  %v1886_v7 = vadd.f32 %v1885_v4, %v1884_v2 }
 0x35f   :  { %v1887_v8 = vpop.f32.mrf.mxu1 }
 0x360   :  { %v1062_v9 = vpack.c.bf16 %v1033_v6, %v1032_v5  ;;  %v926_v12 = vadd.f32 %v1886_v7, %v2660_v34 }
 0x361   :  { %v1888_v10 = vpop.f32.mrf.mxu1 }
 0x362   :  { %v1889_v13 = vadd.f32 %v1888_v10, %v1887_v8  ;;  %2054 = vmatprep.mubr.bf16.mxu0 %v1062_v9  ;;  %v1034_v60 = vmax.f32 %v926_v12, 0.0 }
 0x363   :  { %v1890_v15 = vpop.f32.mrf.mxu1 }
 0x364   :  { %v929_v21 = vadd.f32 %v1889_v13, %v2660_v34 }
 0x365   :  { %v1891_v41 = vpop.f32.mrf.mxu1 }
 0x366   :  { %v1035_v42 = vmax.f32 %v929_v21, 0.0  ;;  %v1892_v46 = vadd.f32 %v1891_v41, %v1890_v15 }
 0x367   :  { %v1893_v61 = vpop.f32.mrf.mxu1 }
 0x368   :  { %v1063_v63 = vpack.c.bf16 %v1035_v42, %v1034_v60  ;;  %v934_v62 = vadd.f32 %v1892_v46, %v2660_v34 }
 0x369   :  { %v1894_v14 = vpop.f32.mrf.mxu1 }
 0x36a   :  { %v1895_v54 = vadd.f32 %v1894_v14, %v1893_v61  ;;  %2055 = vmatmul.mubr.bf16.gmra.mxu0 %v1063_v63  ;;  %v1036_v19 = vmax.f32 %v934_v62, 0.0 }
 0x36b   :  { %v1896_v53 = vpop.f32.mrf.mxu1 }
 0x36c   :  { %v937_v17 = vadd.f32 %v1895_v54, %v2660_v34 }
 0x36d   :  { %v1897_v18 = vpop.f32.mrf.mxu1 }
 0x36e   :  { %v1037_v20 = vmax.f32 %v937_v17, 0.0  ;;  %v1898_v24 = vadd.f32 %v1897_v18, %v1896_v53 }
 0x36f   :  { %v1899_v25 = vpop.f32.mrf.mxu1 }
 0x370   :  { %v1064_v26 = vpack.c.bf16 %v1037_v20, %v1036_v19  ;;  %v942_v28 = vadd.f32 %v1898_v24, %v2660_v34 }
 0x371   :  { %v1900_v27 = vpop.f32.mrf.mxu1 }
 0x372   :  { %v1901_v29 = vadd.f32 %v1900_v27, %v1899_v25  ;;  %2058 = vmatprep.mubr.bf16.mxu0 %v1064_v26  ;;  %v1038_v33 = vmax.f32 %v942_v28, 0.0 }
 0x373   :  { %v1902_v30 = vpop.f32.mrf.mxu1 }
 0x374   :  { %v945_v31 = vadd.f32 %v1901_v29, %v2660_v34 }
 0x375   :  { %v1903_v32 = vpop.f32.mrf.mxu1 }
 0x376   :  { %v1039_v35 = vmax.f32 %v945_v31, 0.0  ;;  %v1904_v36 = vadd.f32 %v1903_v32, %v1902_v30 }
 0x377   :  { %v1905_v37 = vpop.f32.mrf.mxu1 }
 0x378   :  { %v1065_v39 = vpack.c.bf16 %v1039_v35, %v1038_v33  ;;  %v950_v43 = vadd.f32 %v1904_v36, %v2660_v34 }
 0x379   :  { %v1906_v40 = vpop.f32.mrf.mxu1 }
 0x37a   :  { %v1907_v44 = vadd.f32 %v1906_v40, %v1905_v37  ;;  %2059 = vmatmul.mubr.bf16.gmra.mxu0 %v1065_v39  ;;  %v1040_v50 = vmax.f32 %v950_v43, 0.0 }
 0x37b   :  { %v1908_v47 = vpop.f32.mrf.mxu1 }
 0x37c   :  { %v953_v48 = vadd.f32 %v1907_v44, %v2660_v34 }
 0x37d   :  { %v1909_v49 = vpop.f32.mrf.mxu1 }
 0x37e   :  { %v1041_v51 = vmax.f32 %v953_v48, 0.0  ;;  %v1910_v52 = vadd.f32 %v1909_v49, %v1908_v47 }
 0x37f   :  { %v1911_v55 = vpop.f32.mrf.mxu1 }
 0x380   :  { %v1066_v16 = vpack.c.bf16 %v1041_v51, %v1040_v50  ;;  %v958_v23 = vadd.f32 %v1910_v52, %v2660_v34 }
 0x381   :  { %v1912_v22 = vpop.f32.mrf.mxu1 }
 0x382   :  { %v1913_v38 = vadd.f32 %v1912_v22, %v1911_v55  ;;  %2062 = vmatprep.mubr.bf16.mxu0 %v1066_v16  ;;  %v1042_v11 = vmax.f32 %v958_v23, 0.0 }
 0x383   :  { %v1914_v45 = vpop.f32.mrf.mxu1 }
 0x384   :  { %v961_v56 = vadd.f32 %v1913_v38, %v2660_v34 }
 0x385   :  { %v1915_v57 = vpop.f32.mrf.mxu1 }
 0x386   :  { %v1043_v58 = vmax.f32 %v961_v56, 0.0  ;;  %v1916_v59 = vadd.f32 %v1915_v57, %v1914_v45 }
 0x387   :  { %v1917_v0 = vpop.f32.mrf.mxu1 }
 0x388   :  { %v1067_v1 = vpack.c.bf16 %v1043_v58, %v1042_v11  ;;  %v966_v3 = vadd.f32 %v1916_v59, %v2660_v34 }
 0x389   :  { %v1918_v2 = vpop.f32.mrf.mxu1 }
 0x38a   :  { %v1919_v4 = vadd.f32 %v1918_v2, %v1917_v0  ;;  %2063 = vmatmul.mubr.bf16.gmra.mxu0 %v1067_v1  ;;  %v1044_v8 = vmax.f32 %v966_v3, 0.0 }
 0x38b   :  { %v1920_v5 = vpop.f32.mrf.mxu1 }
 0x38c   :  { %v969_v6 = vadd.f32 %v1919_v4, %v2660_v34 }
 0x38d   :  { %v1921_v7 = vpop.f32.mrf.mxu1 }
 0x38e   :  { %v1045_v9 = vmax.f32 %v969_v6, 0.0  ;;  %v1922_v10 = vadd.f32 %v1921_v7, %v1920_v5 }
 0x38f   :  { %v1923_v12 = vpop.f32.mrf.mxu1 }
 0x390   :  { %v1068_v13 = vpack.c.bf16 %v1045_v9, %v1044_v8  ;;  %v974_v21 = vadd.f32 %v1922_v10, %v2660_v34 }
 0x391   :  { %v1924_v15 = vpop.f32.mrf.mxu1 }
 0x392   :  { %v1925_v41 = vadd.f32 %v1924_v15, %v1923_v12  ;;  %2066 = vmatprep.mubr.bf16.mxu0 %v1068_v13  ;;  %v1046_v61 = vmax.f32 %v974_v21, 0.0 }
 0x393   :  { %v1926_v60 = vpop.f32.mrf.mxu1 }
 0x394   :  { %v977_v42 = vadd.f32 %v1925_v41, %v2660_v34 }
 0x395   :  { %v1927_v46 = vpop.f32.mrf.mxu1 }
 0x396   :  { %v1047_v63 = vmax.f32 %v977_v42, 0.0  ;;  %v1928_v14 = vadd.f32 %v1927_v46, %v1926_v60 }
 0x397   :  { %v1929_v62 = vpop.f32.mrf.mxu1 }
 0x398   :  { %v1069_v54 = vpack.c.bf16 %v1047_v63, %v1046_v61  ;;  %v982_v17 = vadd.f32 %v1928_v14, %v2660_v34 }
 0x399   :  { %v1930_v53 = vpop.f32.mrf.mxu1 }
 0x39a   :  { %v1931_v18 = vadd.f32 %v1930_v53, %v1929_v62  ;;  %2067 = vmatmul.mubr.bf16.gmra.mxu0 %v1069_v54  ;;  %v1048_v25 = vmax.f32 %v982_v17, 0.0  ;;  %v2697_v54 = vld [vmem:[%s2999_s6] ss:$0 sm:$0xff]  ;;  %s2415_s6 = smov [#allocation10]  }
 0x39b   :  { %v1932_v19 = vpop.f32.mrf.mxu1  ;;  %s1633_s25 = sshll.u32 %s2415_s6, 4  ;;  %s1634_s25 = int_to_ptr.vmem [resolvable:$true] %s1633_s25 }
 0x39c   :  { %v985_v20 = vadd.f32 %v1931_v18, %v2660_v34  ;;  %s2379_s26 = scalar_lea.vmem %s1634_s25, 4096  ;;  %p2384_p7 = scmp.lt.s32.totalorder %s1634_s25, %s1634_s25 }
 0x39d   :  { %v1933_v24 = vpop.f32.mrf.mxu1  ;;  %p2380_p6 = scmp.ne.s32.totalorder %s1634_s25, %s2379_s26  ;;  %p2385_p8 = scmp.lt.s32.totalorder %s2379_s26, %s2379_s26 }
 0x39e   :  { %v1049_v26 = vmax.f32 %v985_v20, 0.0  ;;  %v1934_v27 = vadd.f32 %v1933_v24, %v1932_v19 }
 0x39f   :  { %v1935_v28 = vpop.f32.mrf.mxu1  ;;  %p2386_p9 = por %p2385_p8, %p2384_p7 }
 0x3a0   :  { %v1070_v29 = vpack.c.bf16 %v1049_v26, %v1048_v25  ;;  %v990_v31 = vadd.f32 %v1934_v27, %v2660_v34 }
 0x3a1   :  { %v1936_v30 = vpop.f32.mrf.mxu1  ;;  %p2387_p10 = pnand %p2386_p9, %p2380_p6 }
 0x3a2   :  { %v1937_v32 = vadd.f32 %v1936_v30, %v1935_v28  ;;  %2070 = vmatprep.mubr.bf16.mxu0 %v1070_v29  ;;  %v1050_v37 = vmax.f32 %v990_v31, 0.0 }
 0x3a3   :  { %v1938_v33 = vpop.f32.mrf.mxu1 }
 0x3a4   :  { %v993_v35 = vadd.f32 %v1937_v32, %v2660_v34 }
 0x3a5   :  { %v1939_v36 = vpop.f32.mrf.mxu1 }
 0x3a6   :  { %v1051_v39 = vmax.f32 %v993_v35, 0.0  ;;  %v1940_v40 = vadd.f32 %v1939_v36, %v1938_v33 }
 0x3a7   :  { %v1941_v43 = vpop.f32.mrf.mxu1 }
 0x3a8   :  { %v1071_v44 = vpack.c.bf16 %v1051_v39, %v1050_v37  ;;  %v998_v48 = vadd.f32 %v1940_v40, %v2660_v34 }
 0x3a9   :  { %v1942_v47 = vpop.f32.mrf.mxu1 }
 0x3aa   :  { %v1943_v49 = vadd.f32 %v1942_v47, %v1941_v43  ;;  %2071 = vmatmul.mubr.bf16.gmra.mxu0 %v1071_v44  ;;  %v1052_v55 = vmax.f32 %v998_v48, 0.0 }
 0x3ab   :  { %v1944_v50 = vpop.f32.mrf.mxu1 }
 0x3ac   :  { %v1001_v51 = vadd.f32 %v1943_v49, %v2660_v34 }
 0x3ad   :  { %v1945_v52 = vpop.f32.mrf.mxu1 }
 0x3ae   :  { %v1053_v16 = vmax.f32 %v1001_v51, 0.0  ;;  %v1946_v22 = vadd.f32 %v1945_v52, %v1944_v50 }
 0x3af   :  { %v1947_v23 = vpop.f32.mrf.mxu1 }
 0x3b0   :  { %v1072_v38 = vpack.c.bf16 %v1053_v16, %v1052_v55  ;;  %v1006_v56 = vadd.f32 %v1946_v22, %v2660_v34 }
 0x3b1   :  { %v1948_v45 = vpop.f32.mrf.mxu1 }
 0x3b2   :  { %v1949_v57 = vadd.f32 %v1948_v45, %v1947_v23  ;;  %2074 = vmatprep.mubr.bf16.mxu0 %v1072_v38  ;;  %v1054_v0 = vmax.f32 %v1006_v56, 0.0 }
 0x3b3   :  { %v1950_v11 = vpop.f32.mrf.mxu1 }
 0x3b4   :  { %v1009_v58 = vadd.f32 %v1949_v57, %v2660_v34 }
 0x3b5   :  { %v1951_v59 = vpop.f32.mrf.mxu1 }
 0x3b6   :  { %v1055_v1 = vmax.f32 %v1009_v58, 0.0  ;;  %v1952_v2 = vadd.f32 %v1951_v59, %v1950_v11 }
 0x3b7   :  { %v1953_v3 = vpop.f32.mrf.mxu1 }
 0x3b8   :  { %v1073_v4 = vpack.c.bf16 %v1055_v1, %v1054_v0  ;;  %v1014_v6 = vadd.f32 %v1952_v2, %v2660_v34 }
 0x3b9   :  { %v1954_v5 = vpop.f32.mrf.mxu1 }
 0x3ba   :  { %v1955_v7 = vadd.f32 %v1954_v5, %v1953_v3  ;;  %2075 = vmatmul.mubr.bf16.gmra.mxu0 %v1073_v4  ;;  %v1056_v12 = vmax.f32 %v1014_v6, 0.0 }
 0x3bb   :  { %v1956_v8 = vpop.f32.mrf.mxu1 }
 0x3bc   :  { %v1017_v9 = vadd.f32 %v1955_v7, %v2660_v34 }
 0x3bd   :  { %v1957_v10 = vpop.f32.mrf.mxu1 }
 0x3be   :  { %v1057_v13 = vmax.f32 %v1017_v9, 0.0  ;;  %v1958_v15 = vadd.f32 %v1957_v10, %v1956_v8 }
 0x3bf   :  { %v1959_v21 = vpop.f32.mrf.mxu1 }
 0x3c0   :  { %v1074_v41 = vpack.c.bf16 %v1057_v13, %v1056_v12  ;;  %v1022_v42 = vadd.f32 %v1958_v15, %v2660_v34 }
 0x3c1   :  { %v1960_v60 = vpop.f32.mrf.mxu1 }
 0x3c2   :  { %v1961_v46 = vadd.f32 %v1960_v60, %v1959_v21  ;;  %2078 = vmatprep.mubr.bf16.mxu0 %v1074_v41  ;;  %v1058_v63 = vmax.f32 %v1022_v42, 0.0 }
 0x3c4   :  { %v1025_v61 = vadd.f32 %v1961_v46, %v2660_v34 }
 0x3c6   :  { %v1059_v14 = vmax.f32 %v1025_v61, 0.0 }
 0x3c8   :  { %v1075_v62 = vpack.c.bf16 %v1059_v14, %v1058_v63 }
 0x3ca   :  { %2079 = vmatmul.mubr.bf16.gmra.mxu0 %v1075_v62 }
 0x41a   :  { %v2052_v53 = vpop.f32.mrf.mxu0 }
 0x41b   :  { %v2700_v17 = vadd.f32 %v2052_v53, %v2697_v54 }
 0x41c   :  { %v1181_v18 = vpop.f32.mrf.mxu0 }
 0x41d   :  { %v2703_v19 = vadd.f32 %v2697_v54, %v1181_v18  ;;  %1312 = vmax.xlane.f32.xlu1 %v2700_v17 }
 0x41e   :  { %v2053_v34 = vpop.f32.mrf.mxu0 }
 0x41f   :  { %v2707_v20 = vadd.f32 %v2053_v34, %v2697_v54  ;;  %1308 = vmax.xlane.f32.xlu0 %v2703_v19 }
 0x420   :  { %v1184_v24 = vpop.f32.mrf.mxu0 }
 0x421   :  { %v2711_v25 = vadd.f32 %v2697_v54, %v1184_v24  ;;  %1314 = vmax.xlane.f32.xlu1 %v2707_v20 }
 0x423   :  { %1310 = vmax.xlane.f32.xlu0 %v2711_v25 }
 0x42a   :  { %v2056_v26 = vpop.f32.mrf.mxu0 }
 0x42b   :  { %v2716_v27 = vadd.f32 %v2056_v26, %v2697_v54 }
 0x42c   :  { %v1197_v28 = vpop.f32.mrf.mxu0 }
 0x42d   :  { %1320 = vmax.xlane.f32.xlu0 %v2716_v27  ;;  %v2720_v30 = vadd.f32 %v2697_v54, %v1197_v28 }
 0x42e   :  { %v2057_v29 = vpop.f32.mrf.mxu0 }
 0x42f   :  { %v2723_v31 = vadd.f32 %v2057_v29, %v2697_v54 }
 0x430   :  { %v1200_v32 = vpop.f32.mrf.mxu0 }
 0x431   :  { %1322 = vmax.xlane.f32.xlu1 %v2723_v31  ;;  %1316 = vmax.xlane.f32.xlu0 %v2720_v30  ;;  %v2728_v33 = vadd.f32 %v2697_v54, %v1200_v32 }
 0x435   :  { %1318 = vmax.xlane.f32.xlu1 %v2728_v33 }
 0x43a   :  { %v2060_v35 = vpop.f32.mrf.mxu0 }
 0x43b   :  { %v2732_v36 = vadd.f32 %v2060_v35, %v2697_v54 }
 0x43c   :  { %v1213_v37 = vpop.f32.mrf.mxu0 }
 0x43d   :  { %1328 = vmax.xlane.f32.xlu0 %v2732_v36  ;;  %v2736_v40 = vadd.f32 %v2697_v54, %v1213_v37 }
 0x43e   :  { %v2061_v39 = vpop.f32.mrf.mxu0 }
 0x43f   :  { %v2739_v43 = vadd.f32 %v2061_v39, %v2697_v54 }
 0x440   :  { %v1216_v44 = vpop.f32.mrf.mxu0 }
 0x441   :  { %1330 = vmax.xlane.f32.xlu1 %v2739_v43  ;;  %1324 = vmax.xlane.f32.xlu0 %v2736_v40  ;;  %v2744_v47 = vadd.f32 %v2697_v54, %v1216_v44 }
 0x445   :  { %1326 = vmax.xlane.f32.xlu1 %v2744_v47 }
 0x44a   :  { %v2064_v48 = vpop.f32.mrf.mxu0 }
 0x44b   :  { %v2748_v49 = vadd.f32 %v2064_v48, %v2697_v54 }
 0x44c   :  { %v1229_v50 = vpop.f32.mrf.mxu0 }
 0x44d   :  { %1336 = vmax.xlane.f32.xlu0 %v2748_v49  ;;  %v2752_v52 = vadd.f32 %v2697_v54, %v1229_v50 }
 0x44e   :  { %v2065_v51 = vpop.f32.mrf.mxu0 }
 0x44f   :  { %v2755_v55 = vadd.f32 %v2065_v51, %v2697_v54 }
 0x450   :  { %v1232_v16 = vpop.f32.mrf.mxu0 }
 0x451   :  { %1338 = vmax.xlane.f32.xlu1 %v2755_v55  ;;  %1332 = vmax.xlane.f32.xlu0 %v2752_v52  ;;  %v2760_v22 = vadd.f32 %v2697_v54, %v1232_v16 }
 0x455   :  { %1334 = vmax.xlane.f32.xlu1 %v2760_v22 }
 0x45a   :  { %v2068_v23 = vpop.f32.mrf.mxu0 }
 0x45b   :  { %v2764_v38 = vadd.f32 %v2068_v23, %v2697_v54 }
 0x45c   :  { %v1245_v45 = vpop.f32.mrf.mxu0 }
 0x45d   :  { %1344 = vmax.xlane.f32.xlu0 %v2764_v38  ;;  %v2768_v57 = vadd.f32 %v2697_v54, %v1245_v45 }
 0x45e   :  { %v2069_v56 = vpop.f32.mrf.mxu0 }
 0x45f   :  { %v2771_v11 = vadd.f32 %v2069_v56, %v2697_v54 }
 0x460   :  { %v1248_v58 = vpop.f32.mrf.mxu0 }
 0x461   :  { %1346 = vmax.xlane.f32.xlu1 %v2771_v11  ;;  %1340 = vmax.xlane.f32.xlu0 %v2768_v57  ;;  %v2776_v59 = vadd.f32 %v2697_v54, %v1248_v58 }
 0x465   :  { %1342 = vmax.xlane.f32.xlu1 %v2776_v59 }
 0x46a   :  { %v2072_v0 = vpop.f32.mrf.mxu0 }
 0x46b   :  { %v2780_v1 = vadd.f32 %v2072_v0, %v2697_v54 }
 0x46c   :  { %v1261_v2 = vpop.f32.mrf.mxu0 }
 0x46d   :  { %1352 = vmax.xlane.f32.xlu0 %v2780_v1  ;;  %v2784_v4 = vadd.f32 %v2697_v54, %v1261_v2 }
 0x46e   :  { %v2073_v3 = vpop.f32.mrf.mxu0 }
 0x46f   :  { %v2787_v5 = vadd.f32 %v2073_v3, %v2697_v54 }
 0x470   :  { %v1264_v6 = vpop.f32.mrf.mxu0 }
 0x471   :  { %1354 = vmax.xlane.f32.xlu1 %v2787_v5  ;;  %1348 = vmax.xlane.f32.xlu0 %v2784_v4  ;;  %v2792_v7 = vadd.f32 %v2697_v54, %v1264_v6 }
 0x475   :  { %1350 = vmax.xlane.f32.xlu1 %v2792_v7 }
 0x47a   :  { %v2076_v8 = vpop.f32.mrf.mxu0 }
 0x47b   :  { %v2796_v9 = vadd.f32 %v2076_v8, %v2697_v54 }
 0x47c   :  { %v1277_v10 = vpop.f32.mrf.mxu0 }
 0x47d   :  { %1360 = vmax.xlane.f32.xlu0 %v2796_v9  ;;  %v2800_v13 = vadd.f32 %v2697_v54, %v1277_v10 }
 0x47e   :  { %v2077_v12 = vpop.f32.mrf.mxu0 }
 0x47f   :  { %v2803_v15 = vadd.f32 %v2077_v12, %v2697_v54 }
 0x480   :  { %v1280_v21 = vpop.f32.mrf.mxu0 }
 0x481   :  { %1362 = vmax.xlane.f32.xlu1 %v2803_v15  ;;  %1356 = vmax.xlane.f32.xlu0 %v2800_v13  ;;  %v2808_v41 = vadd.f32 %v2697_v54, %v1280_v21 }
 0x485   :  { %1358 = vmax.xlane.f32.xlu1 %v2808_v41 }
 0x48a   :  { %v2080_v60 = vpop.f32.mrf.mxu0 }
 0x48b   :  { %v2816_v14 = vadd.f32 %v2080_v60, %v2697_v54 }
 0x48c   :  { %v1293_v42 = vpop.f32.mrf.mxu0 }
 0x48d   :  { %v2812_v46 = vadd.f32 %v2697_v54, %v1293_v42 }
 0x48e   :  { %v2081_v61 = vpop.f32.mrf.mxu0 }
 0x48f   :  { %1364 = vmax.xlane.f32.xlu0 %v2812_v46  ;;  %v2824_v53 = vadd.f32 %v2081_v61, %v2697_v54 }
 0x490   :  { %v1296_v63 = vpop.f32.mrf.mxu0 }
 0x491   :  { %v2819_v62 = vadd.f32 %v2697_v54, %v1296_v63 }
 0x493   :  { %1366 = vmax.xlane.f32.xlu1 %v2819_v62  ;;  %1368 = vmax.xlane.f32.xlu0 %v2816_v14 }
 0x497   :  { %1370 = vmax.xlane.f32.xlu1 %v2824_v53 }
 0x4a6   :  { %v1313_v18 = vpop.xlane.xlu1 %1312 }
 0x4a7   :  { %v1374_v34 = vsub.f32 %v2700_v17, %v1313_v18 }
 0x4a8   :  { %v1309_v24 = vpop.xlane.xlu0 %1308 }
 0x4a9   :  { %v1408_v26 = vmul.f32 1.442695, %v1374_v34  ;;  %v1372_v28 = vsub.f32 %v2703_v19, %v1309_v24 }
 0x4aa   :  { %v1315_v29 = vpop.xlane.xlu1 %1314 }
 0x4ab   :  { %2171 = vpow2.f32 %v1408_v26  ;;  %v1404_v32 = vmul.f32 1.442695, %v1372_v28  ;;  %v1375_v35 = vsub.f32 %v2707_v20, %v1315_v29 }
 0x4ac   :  { %v1311_v37 = vpop.xlane.xlu0 %1310 }
 0x4ad   :  { %v1410_v39 = vmul.f32 1.442695, %v1375_v35  ;;  %v1373_v44 = vsub.f32 %v2711_v25, %v1311_v37  ;;  %2173 = vpow2.f32 %v1404_v32 }
 0x4af   :  { %2175 = vpow2.f32 %v1410_v39  ;;  %v1406_v54 = vmul.f32 1.442695, %v1373_v44 }
 0x4b1   :  { %2177 = vpow2.f32 %v1406_v54 }
 0x4b6   :  { %v1321_v48 = vpop.xlane.xlu0 %1320 }
 0x4b7   :  { %v1378_v17 = vsub.f32 %v2716_v27, %v1321_v48 }
 0x4b8   :  { %v2832_v50 = vpop.eup %2171 }
 0x4b9   :  { %v1416_v51 = vmul.f32 1.442695, %v1378_v17  ;;  %1472 = vadd.xlane.f32.xlu0 %v2832_v50 }
 0x4ba   :  { %v1323_v19 = vpop.xlane.xlu1 %1322  ;;  %v1317_v16 = vpop.xlane.xlu0 %1316 }
 0x4bb   :  { %v2835_v23 = vpop.eup %2173  ;;  %2179 = vpow2.f32 %v1416_v51  ;;  %v1379_v20 = vsub.f32 %v2723_v31, %v1323_v19  ;;  %v1376_v25 = vsub.f32 %v2720_v30, %v1317_v16 }
 0x4bc   :  { %v2839_v45 = vpop.eup %2175 }
 0x4bd   :  { %v1418_v56 = vmul.f32 1.442695, %v1379_v20  ;;  %v1412_v58 = vmul.f32 1.442695, %v1376_v25  ;;  %1474 = vadd.xlane.f32.xlu1 %v2839_v45  ;;  %1468 = vadd.xlane.f32.xlu0 %v2835_v23 }
 0x4be   :  { %v1319_v27 = vpop.xlane.xlu1 %1318  ;;  %v2844_v2 = vpop.eup %2177 }
 0x4bf   :  { %2181 = vpow2.f32 %v1418_v56  ;;  %v1377_v0 = vsub.f32 %v2728_v33, %v1319_v27 }
 0x4c0   :  { %2183 = vpow2.f32 %v1412_v58 }
 0x4c1   :  { %v1414_v3 = vmul.f32 1.442695, %v1377_v0  ;;  %1470 = vadd.xlane.f32.xlu1 %v2844_v2 }
 0x4c3   :  { %2185 = vpow2.f32 %v1414_v3 }
 0x4c6   :  { %v1329_v30 = vpop.xlane.xlu0 %1328 }
 0x4c7   :  { %v1382_v31 = vsub.f32 %v2732_v36, %v1329_v30 }
 0x4c8   :  { %v2848_v6 = vpop.eup %2179 }
 0x4c9   :  { %v1424_v8 = vmul.f32 1.442695, %v1382_v31  ;;  %1480 = vadd.xlane.f32.xlu0 %v2848_v6 }
 0x4ca   :  { %v1331_v10 = vpop.xlane.xlu1 %1330  ;;  %v1325_v12 = vpop.xlane.xlu0 %1324 }
 0x4cb   :  { %2187 = vpow2.f32 %v1424_v8  ;;  %v1383_v33 = vsub.f32 %v2739_v43, %v1331_v10  ;;  %v1380_v21 = vsub.f32 %v2736_v40, %v1325_v12 }
 0x4cc   :  { %v2853_v60 = vpop.eup %2181 }
 0x4cd   :  { %v2855_v42 = vpop.eup %2183  ;;  %v1426_v61 = vmul.f32 1.442695, %v1383_v33  ;;  %v1420_v63 = vmul.f32 1.442695, %v1380_v21  ;;  %1482 = vadd.xlane.f32.xlu1 %v2853_v60 }
 0x4ce   :  { %1476 = vadd.xlane.f32.xlu0 %v2855_v42  ;;  %v1327_v36 = vpop.xlane.xlu1 %1326 }
 0x4cf   :  { %2189 = vpow2.f32 %v1426_v61  ;;  %v1381_v18 = vsub.f32 %v2744_v47, %v1327_v36 }
 0x4d0   :  { %v2860_v34 = vpop.eup %2185  ;;  %2191 = vpow2.f32 %v1420_v63 }
 0x4d1   :  { %v1422_v43 = vmul.f32 1.442695, %v1381_v18  ;;  %1478 = vadd.xlane.f32.xlu1 %v2860_v34 }
 0x4d3   :  { %2193 = vpow2.f32 %v1422_v43 }
 0x4d6   :  { %v1337_v40 = vpop.xlane.xlu0 %1336 }
 0x4d7   :  { %v1386_v24 = vsub.f32 %v2748_v49, %v1337_v40 }
 0x4d8   :  { %v2864_v26 = vpop.eup %2187 }
 0x4d9   :  { %v1432_v28 = vmul.f32 1.442695, %v1386_v24  ;;  %1488 = vadd.xlane.f32.xlu0 %v2864_v26 }
 0x4da   :  { %v1339_v29 = vpop.xlane.xlu1 %1338  ;;  %v1333_v32 = vpop.xlane.xlu0 %1332 }
 0x4db   :  { %2195 = vpow2.f32 %v1432_v28  ;;  %v1387_v47 = vsub.f32 %v2755_v55, %v1339_v29  ;;  %v1384_v35 = vsub.f32 %v2752_v52, %v1333_v32 }
 0x4dc   :  { %v2869_v37 = vpop.eup %2189 }
 0x4dd   :  { %v2871_v39 = vpop.eup %2191  ;;  %v1434_v44 = vmul.f32 1.442695, %v1387_v47  ;;  %v1428_v54 = vmul.f32 1.442695, %v1384_v35  ;;  %1490 = vadd.xlane.f32.xlu1 %v2869_v37 }
 0x4de   :  { %1484 = vadd.xlane.f32.xlu0 %v2871_v39  ;;  %v1335_v49 = vpop.xlane.xlu1 %1334 }
 0x4df   :  { %2197 = vpow2.f32 %v1434_v44  ;;  %v1385_v48 = vsub.f32 %v2760_v22, %v1335_v49 }
 0x4e0   :  { %v2876_v17 = vpop.eup %2193  ;;  %2199 = vpow2.f32 %v1428_v54 }
 0x4e1   :  { %v1430_v55 = vmul.f32 1.442695, %v1385_v48  ;;  %1486 = vadd.xlane.f32.xlu1 %v2876_v17 }
 0x4e3   :  { %2201 = vpow2.f32 %v1430_v55 }
 0x4e6   :  { %v1345_v52 = vpop.xlane.xlu0 %1344 }
 0x4e7   :  { %v1390_v51 = vsub.f32 %v2764_v38, %v1345_v52 }
 0x4e8   :  { %v2880_v19 = vpop.eup %2195 }
 0x4e9   :  { %v1440_v16 = vmul.f32 1.442695, %v1390_v51  ;;  %1496 = vadd.xlane.f32.xlu0 %v2880_v19 }
 0x4ea   :  { %v1347_v20 = vpop.xlane.xlu1 %1346  ;;  %v1341_v25 = vpop.xlane.xlu0 %1340 }
 0x4eb   :  { %2203 = vpow2.f32 %v1440_v16  ;;  %v1391_v22 = vsub.f32 %v2771_v11, %v1347_v20  ;;  %v1388_v56 = vsub.f32 %v2768_v57, %v1341_v25 }
 0x4ec   :  { %v2885_v58 = vpop.eup %2197 }
 0x4ed   :  { %v2887_v27 = vpop.eup %2199  ;;  %v1442_v0 = vmul.f32 1.442695, %v1391_v22  ;;  %v1436_v3 = vmul.f32 1.442695, %v1388_v56  ;;  %1498 = vadd.xlane.f32.xlu1 %v2885_v58 }
 0x4ee   :  { %1492 = vadd.xlane.f32.xlu0 %v2887_v27  ;;  %v1343_v38 = vpop.xlane.xlu1 %1342 }
 0x4ef   :  { %2205 = vpow2.f32 %v1442_v0  ;;  %v1389_v30 = vsub.f32 %v2776_v59, %v1343_v38 }
 0x4f0   :  { %v2892_v31 = vpop.eup %2201  ;;  %2207 = vpow2.f32 %v1436_v3 }
 0x4f1   :  { %v1438_v11 = vmul.f32 1.442695, %v1389_v30  ;;  %1494 = vadd.xlane.f32.xlu1 %v2892_v31 }
 0x4f3   :  { %2209 = vpow2.f32 %v1438_v11 }
 0x4f6   :  { %v1353_v57 = vpop.xlane.xlu0 %1352 }
 0x4f7   :  { %v1394_v8 = vsub.f32 %v2780_v1, %v1353_v57 }
 0x4f8   :  { %v2896_v10 = vpop.eup %2203 }
 0x4f9   :  { %v1448_v12 = vmul.f32 1.442695, %v1394_v8  ;;  %1504 = vadd.xlane.f32.xlu0 %v2896_v10 }
 0x4fa   :  { %v1355_v33 = vpop.xlane.xlu1 %1354  ;;  %v1349_v21 = vpop.xlane.xlu0 %1348 }
 0x4fb   :  { %2211 = vpow2.f32 %v1448_v12  ;;  %v1395_v59 = vsub.f32 %v2787_v5, %v1355_v33  ;;  %v1392_v61 = vsub.f32 %v2784_v4, %v1349_v21 }
 0x4fc   :  { %v2901_v63 = vpop.eup %2205 }
 0x4fd   :  { %v2903_v36 = vpop.eup %2207  ;;  %v1450_v18 = vmul.f32 1.442695, %v1395_v59  ;;  %v1444_v43 = vmul.f32 1.442695, %v1392_v61  ;;  %1506 = vadd.xlane.f32.xlu1 %v2901_v63 }
 0x4fe   :  { %1500 = vadd.xlane.f32.xlu0 %v2903_v36  ;;  %v1351_v1 = vpop.xlane.xlu1 %1350 }
 0x4ff   :  { %2213 = vpow2.f32 %v1450_v18  ;;  %v1393_v40 = vsub.f32 %v2792_v7, %v1351_v1 }
 0x500   :  { %v2908_v24 = vpop.eup %2209  ;;  %2215 = vpow2.f32 %v1444_v43 }
 0x501   :  { %v1446_v5 = vmul.f32 1.442695, %v1393_v40  ;;  %1502 = vadd.xlane.f32.xlu1 %v2908_v24 }
 0x503   :  { %2217 = vpow2.f32 %v1446_v5 }
 0x506   :  { %v1361_v4 = vpop.xlane.xlu0 %1360 }
 0x507   :  { %v1398_v28 = vsub.f32 %v2796_v9, %v1361_v4 }
 0x508   :  { %v2912_v29 = vpop.eup %2211 }
 0x509   :  { %v1456_v32 = vmul.f32 1.442695, %v1398_v28  ;;  %1512 = vadd.xlane.f32.xlu0 %v2912_v29 }
 0x50a   :  { %v1363_v47 = vpop.xlane.xlu1 %1362  ;;  %v1357_v35 = vpop.xlane.xlu0 %1356 }
 0x50b   :  { %2219 = vpow2.f32 %v1456_v32  ;;  %v1399_v7 = vsub.f32 %v2803_v15, %v1363_v47  ;;  %v1396_v44 = vsub.f32 %v2800_v13, %v1357_v35 }
 0x50c   :  { %v2917_v54 = vpop.eup %2213 }
 0x50d   :  { %v2919_v49 = vpop.eup %2215  ;;  %v1458_v48 = vmul.f32 1.442695, %v1399_v7  ;;  %v1452_v55 = vmul.f32 1.442695, %v1396_v44  ;;  %1514 = vadd.xlane.f32.xlu1 %v2917_v54 }
 0x50e   :  { %1508 = vadd.xlane.f32.xlu0 %v2919_v49  ;;  %v1359_v9 = vpop.xlane.xlu1 %1358 }
 0x50f   :  { %2221 = vpow2.f32 %v1458_v48  ;;  %v1397_v52 = vsub.f32 %v2808_v41, %v1359_v9 }
 0x510   :  { %v2924_v51 = vpop.eup %2217  ;;  %2223 = vpow2.f32 %v1452_v55 }
 0x511   :  { %v1454_v15 = vmul.f32 1.442695, %v1397_v52  ;;  %1510 = vadd.xlane.f32.xlu1 %v2924_v51 }
 0x513   :  { %2225 = vpow2.f32 %v1454_v15 }
 0x518   :  { %v2927_v13 = vpop.eup %2219  ;;  %v1365_v16 = vpop.xlane.xlu0 %1364 }
 0x519   :  { %v1400_v20 = vsub.f32 %v2812_v46, %v1365_v16  ;;  %1520 = vadd.xlane.f32.xlu0 %v2927_v13 }
 0x51b   :  { %v1460_v25 = vmul.f32 1.442695, %v1400_v20 }
 0x51c   :  { %v2931_v22 = vpop.eup %2221  ;;  %v1367_v56 = vpop.xlane.xlu1 %1366 }
 0x51d   :  { %v1369_v0 = vpop.xlane.xlu0 %1368  ;;  %v2933_v41 = vpop.eup %2223  ;;  %2227 = vpow2.f32 %v1460_v25  ;;  %v1401_v3 = vsub.f32 %v2819_v62, %v1367_v56  ;;  %1522 = vadd.xlane.f32.xlu1 %v2931_v22 }
 0x51e   :  { %v1402_v38 = vsub.f32 %v2816_v14, %v1369_v0  ;;  %1516 = vadd.xlane.f32.xlu0 %v2933_v41 }
 0x51f   :  { %v1462_v30 = vmul.f32 1.442695, %v1401_v3 }
 0x520   :  { %v1464_v46 = vmul.f32 1.442695, %v1402_v38  ;;  %v2939_v11 = vpop.eup %2225  ;;  %v1371_v57 = vpop.xlane.xlu1 %1370 }
 0x521   :  { %2229 = vpow2.f32 %v1462_v30  ;;  %v1403_v8 = vsub.f32 %v2824_v53, %v1371_v57  ;;  %1518 = vadd.xlane.f32.xlu1 %v2939_v11 }
 0x522   :  { %2231 = vpow2.f32 %v1464_v46 }
 0x523   :  { %v1466_v12 = vmul.f32 1.442695, %v1403_v8 }
 0x525   :  { %2233 = vpow2.f32 %v1466_v12 }
 0x52a   :  { %v2943_v62 = vpop.eup %2227 }
 0x52b   :  { %1524 = vadd.xlane.f32.xlu0 %v2943_v62 }
 0x52e   :  { %v2946_v14 = vpop.eup %2229 }
 0x52f   :  { %v2948_v33 = vpop.eup %2231  ;;  %1526 = vadd.xlane.f32.xlu1 %v2946_v14 }
 0x530   :  { %1528 = vadd.xlane.f32.xlu0 %v2948_v33 }
 0x532   :  { %v2952_v21 = vpop.eup %2233 }
 0x533   :  { %1530 = vadd.xlane.f32.xlu1 %v2952_v21 }
 0x542   :  { %v1473_v53 = vpop.xlane.xlu0 %1472 }
 0x543   :  { %2235 = vrcp.f32 %v1473_v53 }
 0x546   :  { %v1475_v59 = vpop.xlane.xlu1 %1474  ;;  %v1469_v61 = vpop.xlane.xlu0 %1468 }
 0x547   :  { %2237 = vrcp.f32 %v1475_v59 }
 0x548   :  { %2239 = vrcp.f32 %v1469_v61 }
 0x54a   :  { %v1471_v18 = vpop.xlane.xlu1 %1470 }
 0x54b   :  { %2241 = vrcp.f32 %v1471_v18 }
 0x550   :  { %v2236_v43 = vpop.eup %2235 }
 0x551   :  { %v1566_v1 = vmul.f32 %v2236_v43, %v2832_v50 }
 0x552   :  { %v1481_v40 = vpop.xlane.xlu0 %1480 }
 0x553   :  { %1598 = vst [vmem:[#allocation10 + $0x10] sm:$0xff] %v1566_v1  ;;  %2243 = vrcp.f32 %v1481_v40 }
 0x554   :  { %v2238_v5 = vpop.eup %2237 }
 0x555   :  { %v2240_v4 = vpop.eup %2239  ;;  %v1567_v28 = vmul.f32 %v2238_v5, %v2839_v45 }
 0x556   :  { %v1564_v32 = vmul.f32 %v2240_v4, %v2835_v23  ;;  %v1483_v47 = vpop.xlane.xlu1 %1482 }
 0x557   :  { %1599 = vst [vmem:[#allocation10 + $0x18] sm:$0xff] %v1567_v28  ;;  %2245 = vrcp.f32 %v1483_v47  ;;  %v1477_v35 = vpop.xlane.xlu0 %1476 }
 0x558   :  { %v2242_v7 = vpop.eup %2241  ;;  %1596 = vst [vmem:[#allocation10] sm:$0xff] %v1564_v32  ;;  %2247 = vrcp.f32 %v1477_v35 }
 0x559   :  { %v1565_v44 = vmul.f32 %v2242_v7, %v2844_v2 }
 0x55a   :  { %v1479_v48 = vpop.xlane.xlu1 %1478 }
 0x55b   :  { %1597 = vst [vmem:[#allocation10 + $0x8] sm:$0xff] %v1565_v44  ;;  %2249 = vrcp.f32 %v1479_v48 }
 0x560   :  { %v2244_v50 = vpop.eup %2243 }
 0x561   :  { %v1570_v55 = vmul.f32 %v2244_v50, %v2848_v6 }
 0x562   :  { %v1489_v9 = vpop.xlane.xlu0 %1488 }
 0x563   :  { %1602 = vst [vmem:[#allocation10 + $0x30] sm:$0xff] %v1570_v55  ;;  %2251 = vrcp.f32 %v1489_v9 }
 0x564   :  { %v2246_v45 = vpop.eup %2245 }
 0x565   :  { %v2248_v23 = vpop.eup %2247  ;;  %v1571_v52 = vmul.f32 %v2246_v45, %v2853_v60 }
 0x566   :  { %v1568_v15 = vmul.f32 %v2248_v23, %v2855_v42  ;;  %v1491_v16 = vpop.xlane.xlu1 %1490 }
 0x567   :  { %1603 = vst [vmem:[#allocation10 + $0x38] sm:$0xff] %v1571_v52  ;;  %2253 = vrcp.f32 %v1491_v16  ;;  %v1485_v20 = vpop.xlane.xlu0 %1484 }
 0x568   :  { %v2250_v2 = vpop.eup %2249  ;;  %1600 = vst [vmem:[#allocation10 + $0x20] sm:$0xff] %v1568_v15  ;;  %2255 = vrcp.f32 %v1485_v20 }
 0x569   :  { %v1569_v25 = vmul.f32 %v2250_v2, %v2860_v34 }
 0x56a   :  { %v1487_v56 = vpop.xlane.xlu1 %1486 }
 0x56b   :  { %1601 = vst [vmem:[#allocation10 + $0x28] sm:$0xff] %v1569_v25  ;;  %2257 = vrcp.f32 %v1487_v56 }
 0x570   :  { %v2252_v6 = vpop.eup %2251 }
 0x571   :  { %v1574_v0 = vmul.f32 %v2252_v6, %v2864_v26 }
 0x572   :  { %v1497_v3 = vpop.xlane.xlu0 %1496 }
 0x573   :  { %1606 = vst [vmem:[#allocation10 + $0x50] sm:$0xff] %v1574_v0  ;;  %2259 = vrcp.f32 %v1497_v3 }
 0x574   :  { %v2254_v60 = vpop.eup %2253 }
 0x575   :  { %v2256_v42 = vpop.eup %2255  ;;  %v1575_v38 = vmul.f32 %v2254_v60, %v2869_v37 }
 0x576   :  { %v1572_v30 = vmul.f32 %v2256_v42, %v2871_v39  ;;  %v1499_v46 = vpop.xlane.xlu1 %1498 }
 0x577   :  { %1607 = vst [vmem:[#allocation10 + $0x58] sm:$0xff] %v1575_v38  ;;  %2261 = vrcp.f32 %v1499_v46  ;;  %v1493_v57 = vpop.xlane.xlu0 %1492 }
 0x578   :  { %v2258_v34 = vpop.eup %2257  ;;  %1604 = vst [vmem:[#allocation10 + $0x40] sm:$0xff] %v1572_v30  ;;  %2263 = vrcp.f32 %v1493_v57 }
 0x579   :  { %v1573_v8 = vmul.f32 %v2258_v34, %v2876_v17 }
 0x57a   :  { %v1495_v12 = vpop.xlane.xlu1 %1494 }
 0x57b   :  { %1605 = vst [vmem:[#allocation10 + $0x48] sm:$0xff] %v1573_v8  ;;  %2265 = vrcp.f32 %v1495_v12 }
 0x580   :  { %v2260_v26 = vpop.eup %2259 }
 0x581   :  { %v1578_v53 = vmul.f32 %v2260_v26, %v2880_v19 }
 0x582   :  { %v1505_v59 = vpop.xlane.xlu0 %1504 }
 0x583   :  { %1610 = vst [vmem:[#allocation10 + $0x70] sm:$0xff] %v1578_v53  ;;  %2267 = vrcp.f32 %v1505_v59 }
 0x584   :  { %v2262_v37 = vpop.eup %2261 }
 0x585   :  { %v2264_v39 = vpop.eup %2263  ;;  %v1579_v61 = vmul.f32 %v2262_v37, %v2885_v58 }
 0x586   :  { %v1576_v18 = vmul.f32 %v2264_v39, %v2887_v27  ;;  %v1507_v43 = vpop.xlane.xlu1 %1506 }
 0x587   :  { %1611 = vst [vmem:[#allocation10 + $0x78] sm:$0xff] %v1579_v61  ;;  %2269 = vrcp.f32 %v1507_v43  ;;  %v1501_v1 = vpop.xlane.xlu0 %1500 }
 0x588   :  { %v2266_v17 = vpop.eup %2265  ;;  %1608 = vst [vmem:[#allocation10 + $0x60] sm:$0xff] %v1576_v18  ;;  %2271 = vrcp.f32 %v1501_v1 }
 0x589   :  { %v1577_v40 = vmul.f32 %v2266_v17, %v2892_v31 }
 0x58a   :  { %v1503_v5 = vpop.xlane.xlu1 %1502 }
 0x58b   :  { %1609 = vst [vmem:[#allocation10 + $0x68] sm:$0xff] %v1577_v40  ;;  %2273 = vrcp.f32 %v1503_v5 }
 0x590   :  { %v2268_v19 = vpop.eup %2267 }
 0x591   :  { %v1582_v4 = vmul.f32 %v2268_v19, %v2896_v10 }
 0x592   :  { %v1513_v28 = vpop.xlane.xlu0 %1512 }
 0x593   :  { %1614 = vst [vmem:[#allocation10 + $0x90] sm:$0xff] %v1582_v4  ;;  %2275 = vrcp.f32 %v1513_v28 }
 0x594   :  { %v2270_v58 = vpop.eup %2269 }
 0x595   :  { %v2272_v27 = vpop.eup %2271  ;;  %v1583_v32 = vmul.f32 %v2270_v58, %v2901_v63 }
 0x596   :  { %v1580_v47 = vmul.f32 %v2272_v27, %v2903_v36  ;;  %v1515_v35 = vpop.xlane.xlu1 %1514 }
 0x597   :  { %1615 = vst [vmem:[#allocation10 + $0x98] sm:$0xff] %v1583_v32  ;;  %2277 = vrcp.f32 %v1515_v35  ;;  %v1509_v7 = vpop.xlane.xlu0 %1508 }
 0x598   :  { %v2274_v31 = vpop.eup %2273  ;;  %1612 = vst [vmem:[#allocation10 + $0x80] sm:$0xff] %v1580_v47  ;;  %2279 = vrcp.f32 %v1509_v7 }
 0x599   :  { %v1581_v44 = vmul.f32 %v2274_v31, %v2908_v24 }
 0x59a   :  { %v1511_v48 = vpop.xlane.xlu1 %1510 }
 0x59b   :  { %1613 = vst [vmem:[#allocation10 + $0x88] sm:$0xff] %v1581_v44  ;;  %2281 = vrcp.f32 %v1511_v48 }
 0x5a0   :  { %v2276_v10 = vpop.eup %2275 }
 0x5a1   :  { %v1586_v50 = vmul.f32 %v2276_v10, %v2912_v29 }
 0x5a2   :  { %v1521_v55 = vpop.xlane.xlu0 %1520 }
 0x5a3   :  { %1618 = vst [vmem:[#allocation10 + $0xb0] sm:$0xff] %v1586_v50  ;;  %2283 = vrcp.f32 %v1521_v55 }
 0x5a4   :  { %v2278_v63 = vpop.eup %2277 }
 0x5a5   :  { %v2280_v36 = vpop.eup %2279  ;;  %v1587_v9 = vmul.f32 %v2278_v63, %v2917_v54 }
 0x5a6   :  { %v1584_v45 = vmul.f32 %v2280_v36, %v2919_v49  ;;  %v1523_v23 = vpop.xlane.xlu1 %1522 }
 0x5a7   :  { %1619 = vst [vmem:[#allocation10 + $0xb8] sm:$0xff] %v1587_v9  ;;  %2285 = vrcp.f32 %v1523_v23  ;;  %v1517_v52 = vpop.xlane.xlu0 %1516 }
 0x5a8   :  { %v2282_v24 = vpop.eup %2281  ;;  %1616 = vst [vmem:[#allocation10 + $0xa0] sm:$0xff] %v1584_v45  ;;  %2287 = vrcp.f32 %v1517_v52 }
 0x5a9   :  { %v1585_v15 = vmul.f32 %v2282_v24, %v2924_v51 }
 0x5aa   :  { %v1519_v16 = vpop.xlane.xlu1 %1518 }
 0x5ab   :  { %1617 = vst [vmem:[#allocation10 + $0xa8] sm:$0xff] %v1585_v15  ;;  %2289 = vrcp.f32 %v1519_v16 }
 0x5b0   :  { %v2284_v29 = vpop.eup %2283 }
 0x5b1   :  { %v1590_v20 = vmul.f32 %v2284_v29, %v2927_v13 }
 0x5b3   :  { %1622 = vst [vmem:[#allocation10 + $0xd0] sm:$0xff] %v1590_v20 }
 0x5b4   :  { %v2286_v2 = vpop.eup %2285  ;;  %v1525_v54 = vpop.xlane.xlu0 %1524 }
 0x5b5   :  { %v2288_v25 = vpop.eup %2287  ;;  %v1591_v49 = vmul.f32 %v2286_v2, %v2931_v22  ;;  %2291 = vrcp.f32 %v1525_v54 }
 0x5b6   :  { %v1588_v56 = vmul.f32 %v2288_v25, %v2933_v41 }
 0x5b7   :  { %1623 = vst [vmem:[#allocation10 + $0xd8] sm:$0xff] %v1591_v49 }
 0x5b8   :  { %v2290_v6 = vpop.eup %2289  ;;  %1620 = vst [vmem:[#allocation10 + $0xc0] sm:$0xff] %v1588_v56  ;;  %v1527_v0 = vpop.xlane.xlu1 %1526 }
 0x5b9   :  { %v1589_v51 = vmul.f32 %v2290_v6, %v2939_v11  ;;  %2293 = vrcp.f32 %v1527_v0  ;;  %v1529_v3 = vpop.xlane.xlu0 %1528 }
 0x5ba   :  { %2295 = vrcp.f32 %v1529_v3 }
 0x5bb   :  { %1621 = vst [vmem:[#allocation10 + $0xc8] sm:$0xff] %v1589_v51 }
 0x5bc   :  { %v1531_v13 = vpop.xlane.xlu1 %1530 }
 0x5bd   :  { %2297 = vrcp.f32 %v1531_v13 }
 0x5c2   :  { %v2292_v60 = vpop.eup %2291 }
 0x5c3   :  { %v1592_v42 = vmul.f32 %v2292_v60, %v2943_v62 }
 0x5c5   :  { %1624 = vst [vmem:[#allocation10 + $0xe0] sm:$0xff] %v1592_v42 }
 0x5c6   :  { %v2294_v22 = vpop.eup %2293 }
 0x5c7   :  { %v2296_v38 = vpop.eup %2295  ;;  %v1593_v41 = vmul.f32 %v2294_v22, %v2946_v14 }
 0x5c8   :  { %v1594_v30 = vmul.f32 %v2296_v38, %v2948_v33 }
 0x5c9   :  { %1625 = vst [vmem:[#allocation10 + $0xe8] sm:$0xff] %v1593_v41 }
 0x5ca   :  { %v2298_v11 = vpop.eup %2297  ;;  %1626 = vst [vmem:[#allocation10 + $0xf0] sm:$0xff] %v1594_v30 }
 0x5cb   :  { %v1595_v46 = vmul.f32 %v2298_v11, %v2952_v21 }
 0x5cd   :  { %1627 = vst [vmem:[#allocation10 + $0xf8] sm:$0xff] %v1595_v46 }
 0x5ce   :  { %2390 = shalt.err (!%p2387_p10)
}
 0x5cf   :  { %1639 = dma.vmem_to_hbm [thread:$0]  %s1634_s25, 4096, %s3000_s7, [#allocation4], %s2411_s11, %s2411_s11, %s2412_s12  }
 0x5d0   :  { %2405 = dma.done.wait [#allocation4], 4096  }
 0x5d1   :  { %2406 = vsyncadd [#allocation4], 4294963200 }
 0x5d2   :  { %1643 = vsyncpa [#allocation3], 1 }
 0x5d3   :  { %1644 = vsyncpa [#allocation6], 1 }
 0x5d4   :  { %1645 = vsyncpa [#allocation9], 1 }
 0x5d5   :  { %1646 = vsyncpa [#allocation4], 1 }

</bundles_post_ra>
